<compile_context>
chip_gen: v7x
topology: tpu7x:2x2x1
jax: 0.10.0
libtpu: 0.0.40
codegen_flags: <defaults>
</compile_context>

<pallas_src>
import math

import jax
import jax.numpy as jnp
from jax import lax
from jax.experimental import pallas as pl
from jax.experimental.pallas import tpu as pltpu

EPS = 1e-5
NEG_SLOPE = 0.1
ATT_DIM = 128            # query / key channel count inside Spatial_Attention_conv
LANE = 128               # lane width used to pad the logits output
NEG_SENTINEL = -1e30


# ----------------------------------------------------------------------------
# Fused Pallas kernel: all Spatial_Attention_Block_GIN blocks + readout + MLP
# ----------------------------------------------------------------------------
def _make_fused_kernel(d, block_num, num_graphs):
    qw = block_num * ATT_DIM       # width of the stacked Q group (== K group)

    def leaky(z):
        return jnp.where(z > 0, z, NEG_SLOPE * z)

    def col_norm_core(z):
        # GroupNorm(C groups, C channels) on (1, C, N): each channel normalized over
        # nodes; the affine (g, b) is folded into the following 1x1 conv on the host,
        # so only the (x - mu) * rsqrt(var) core is computed here.  Column stats are
        # independent, so one call on a wide tile == per-chunk calls.
        mu = jnp.mean(z, axis=0, keepdims=True)
        var = jnp.mean((z - mu) ** 2, axis=0, keepdims=True)
        return (z - mu) * lax.rsqrt(var + EPS)

    def gelu(h):  # exact (erf) GELU, matching torch F.gelu default
        return 0.5 * h * (1.0 + lax.erf(h * (1.0 / math.sqrt(2.0))))

    def kernel(xcat_ref, bicat_ref, memb_nt_ref, memb_gn_ref,
               wbn_ref, bbn_ref, wqkv_ref, bqkv_ref, lng_ref, lnb_ref,
               w0_ref, b0_ref, w1_ref, b1_ref, w2_ref, b2_ref,
               logits_ref, graphs_ref):
        # ------------------------------------------------------------------
        # Shared GroupNorm core of the (never materialized) block_fusion concat
        # ------------------------------------------------------------------
        xcat = xcat_ref[...]                              # (N, (B+1)*D) lane-dense
        cores = col_norm_core(xcat)                       # one norm over 128 lanes

        # All B bottlenecks in ONE dot (zero-padded, affine-folded weights).
        y = jnp.dot(cores, wbn_ref[...],
                    preferred_element_type=jnp.float32) + bbn_ref[...]
        y = leaky(y)                                      # (N, B*D)
        y_core = col_norm_core(y)                         # one norm over B*D lanes

        # All B Q/K/V branches in ONE block-diagonal dot ([Q|K|V] group layout).
        qkv = jnp.dot(y_core, wqkv_ref[...],
                      preferred_element_type=jnp.float32) + bqkv_ref[...]
        qkv = leaky(qkv)                                  # (N, 2*B*128 + B*D)

        bicat = bicat_ref[...]                            # (N, B*D) dense-connection sums
        hiddens = []
        for i in range(block_num):
            q = qkv[:, i * ATT_DIM:(i + 1) * ATT_DIM]             # 128-lane aligned
            k = qkv[:, qw + i * ATT_DIM:qw + (i + 1) * ATT_DIM]   # 128-lane aligned
            v = qkv[:, 2 * qw + i * d:2 * qw + (i + 1) * d]       # (N, D)

            # spatial attention: att = K @ Q^T (no 1/sqrt scaling, as in the
            # original); softmax over dim=1.  Exact f32, no bf16 round trips.
            att = lax.dot_general(k, q, (((1,), (1,)), ((), ())),
                                  preferred_element_type=jnp.float32)   # (N, N)
            att = att - jnp.max(att, axis=1, keepdims=True)
            e = jnp.exp(att)
            att = e / jnp.sum(e, axis=1, keepdims=True)

            rw = jnp.dot(att, v, preferred_element_type=jnp.float32)    # (N, D)
            rw = leaky(rw)

            # LayerNorm over the feature dim D
            mu = jnp.mean(rw, axis=1, keepdims=True)
            var = jnp.mean((rw - mu) ** 2, axis=1, keepdims=True)
            rw = (rw - mu) * lax.rsqrt(var + EPS) * lng_ref[i:i + 1, :] \
                 + lnb_ref[i:i + 1, :]

            hiddens.append(bicat[:, i * d:(i + 1) * d] + rw)

        # Lane-dense pyramid of hiddens: (N, (B+1)*D) == (N, 128)
        h_cat = jnp.concatenate([xcat[:, :d]] + hiddens, axis=1)

        # ------------------------------------------------------------------
        # Graph readout: matmul sum-pool + masked max-pool, merged by sum.
        # TODO(synk): GraphReadout ('rnn-sum-max') source not provided upstream;
        # this keeps the same stand-in semantics as the reference implementation.
        # ------------------------------------------------------------------
        sp = jnp.dot(memb_gn_ref[...], h_cat,
                     preferred_element_type=jnp.float32)          # (G, (B+1)*D)
        memb_nt = memb_nt_ref[...]                                 # (N, G)
        rows = []
        for g in range(num_graphs):
            mask = memb_nt[:, g:g + 1] > 0.5                       # (N, 1)
            m = jnp.max(jnp.where(mask, h_cat, NEG_SENTINEL), axis=0, keepdims=True)
            m = jnp.where(m <= NEG_SENTINEL * 0.5, 0.0, m)
            rows.append(m)
        mp = jnp.concatenate(rows, axis=0)                         # (G, (B+1)*D)
        graphs = sp + mp
        graphs_ref[...] = graphs

        # classifier MLP; eval-mode BatchNorm folded into dense0/dense1 on the host.
        h = jnp.dot(graphs, w0_ref[...],
                    preferred_element_type=jnp.float32) + b0_ref[...]
        h = gelu(h)
        h = jnp.dot(h, w1_ref[...],
                    preferred_element_type=jnp.float32) + b1_ref[...]
        h = gelu(h)
        # lane-dense (padded to 128) logits store; wrapper slices [:, :out_dim].
        logits_ref[...] = jnp.dot(h, w2_ref[...],
                                  preferred_element_type=jnp.float32) + b2_ref[...]

    return kernel


def fused_attention_readout_mlp(xcat, bicat, memb_nt, memb_gn, fp,
                                block_num, d, out_dim):
    num_graphs = memb_nt.shape[1]
    kernel = _make_fused_kernel(d, block_num, num_graphs)
    vmem = pl.BlockSpec(memory_space=pltpu.MemorySpace.VMEM)
    args = (xcat, bicat, memb_nt, memb_gn,
            fp["wbn"], fp["bbn"], fp["wqkv"], fp["bqkv"], fp["lng"], fp["lnb"],
            fp["w0"], fp["b0"], fp["w1"], fp["b1"], fp["w2p"], fp["b2p"])
    logits_pad, graphs = pl.pallas_call(
        kernel,
        out_shape=(jax.ShapeDtypeStruct((num_graphs, LANE), jnp.float32),
                   jax.ShapeDtypeStruct((num_graphs, (block_num + 1) * d),
                                        jnp.float32)),
        in_specs=[vmem] * len(args),
        out_specs=(vmem, vmem),
    )(*args)
    return logits_pad[:, :out_dim], graphs


# ----------------------------------------------------------------------------
# Host-side weight folding / packing (done once, outside the forward pass)
# ----------------------------------------------------------------------------
def fold_and_pack_params(params, input_dim, block_num):
    d = input_dim
    c_fuse = (block_num + 1) * d
    qw = block_num * ATT_DIM

    wbn_cols, bbn_l = [], []
    wq_blk = jnp.zeros((block_num * d, qw), jnp.float32)
    wk_blk = jnp.zeros((block_num * d, qw), jnp.float32)
    wv_blk = jnp.zeros((block_num * d, block_num * d), jnp.float32)
    bq_l, bk_l, bv_l, lng_l, lnb_l = [], [], [], [], []

    for i in range(block_num):
        p = params["att"][i]
        c_in = (i + 2) * d
        # fold the bottleneck GroupNorm affine into the 1x1 conv; zero-pad chunks so
        # every block works against the shared (B+1)-chunk GroupNorm cores; stack
        # all blocks along the output dim -> one fused matmul.
        w = p["w_bn"].T * p["gn_bn_g"][:, None]                     # (C_in, D)
        w = jnp.concatenate(
            [w, jnp.zeros((c_fuse - c_in, d), jnp.float32)], axis=0)
        wbn_cols.append(w)
        bbn_l.append(p["gn_bn_b"] @ p["w_bn"].T + p["b_bn"])        # (D,)

        # fold the per-branch GroupNorm affines and place the Q/K/V weights on a
        # block diagonal, grouped as [all Q | all K | all V] so per-block Q/K
        # slices are 128-lane aligned inside the kernel.
        wq = p["w_q"].T * p["gn_q_g"][:, None]                      # (D, 128)
        wk = p["w_k"].T * p["gn_k_g"][:, None]                      # (D, 128)
        wv = p["w_v"].T * p["gn_v_g"][:, None]                      # (D, D)
        wq_blk = wq_blk.at[i * d:(i + 1) * d, i * ATT_DIM:(i + 1) * ATT_DIM].set(wq)
        wk_blk = wk_blk.at[i * d:(i + 1) * d, i * ATT_DIM:(i + 1) * ATT_DIM].set(wk)
        wv_blk = wv_blk.at[i * d:(i + 1) * d, i * d:(i + 1) * d].set(wv)
        bq_l.append(p["gn_q_b"] @ p["w_q"].T + p["b_q"])
        bk_l.append(p["gn_k_b"] @ p["w_k"].T + p["b_k"])
        bv_l.append(p["gn_v_b"] @ p["w_v"].T + p["b_v"])
        lng_l.append(p["ln_g"])
        lnb_l.append(p["ln_b"])

    wbn_all = jnp.concatenate(wbn_cols, axis=1)                     # ((B+1)*D, B*D)
    bbn_all = jnp.concatenate(bbn_l, axis=0).reshape(1, -1)         # (1, B*D)
    wqkv_all = jnp.concatenate([wq_blk, wk_blk, wv_blk], axis=1)    # (B*D, 2*B*128+B*D)
    bqkv_all = jnp.concatenate(bq_l + bk_l + bv_l, axis=0).reshape(1, -1)

    m = params["mlp"]
    # eval-mode BatchNorm1d folded into the preceding Linear
    s0 = m["g0"] * lax.rsqrt(m["rv0"] + EPS)
    w0 = m["w0"].T * s0[None, :]
    b0 = (m["b0"] - m["rm0"]) * s0 + m["be0"]
    s1 = m["g1"] * lax.rsqrt(m["rv1"] + EPS)
    w1 = m["w1"].T * s1[None, :]
    b1 = (m["b1"] - m["rm1"]) * s1 + m["be1"]

    out_dim = m["w2"].shape[0]
    cdim = m["w2"].shape[1]
    # pad the final projection to a lane-dense 128-wide output
    w2p = jnp.zeros((cdim, LANE), jnp.float32).at[:, :out_dim].set(m["w2"].T)
    b2p = jnp.zeros((1, LANE), jnp.float32).at[0, :out_dim].set(m["b2"])

    return dict(
        wbn=wbn_all, bbn=bbn_all,
        wqkv=wqkv_all, bqkv=bqkv_all,
        lng=jnp.stack(lng_l), lnb=jnp.stack(lnb_l),
        w0=w0, b0=b0.reshape(1, -1),
        w1=w1, b1=b1.reshape(1, -1),
        w2p=w2p, b2p=b2p,
    )


# ----------------------------------------------------------------------------
# Plain-JAX glue: embedding sum and GraphConv stand-in
# ----------------------------------------------------------------------------
def graph_conv(x, edges, w, b):
    # TODO(synk): GraphConv source not provided upstream; stand-in = (sum+max)
    # neighbor aggregation over `edges` merged by sum, followed by Linear + LeakyReLU.
    nbr, ctr = edges[0], edges[1]
    msgs = x[nbr]
    n = x.shape[0]
    agg_sum = jax.ops.segment_sum(msgs, ctr, num_segments=n)
    agg_max = jax.ops.segment_max(msgs, ctr, num_segments=n)
    agg_max = jnp.where(jnp.isfinite(agg_max), agg_max, 0.0)
    h = (agg_sum + agg_max) @ w.T + b
    return jnp.where(h > 0, h, NEG_SLOPE * h)


# ----------------------------------------------------------------------------
# Model forward (model_4v4_mulitfeats, eval mode)
# ----------------------------------------------------------------------------
def model_forward(x_tokens, edges, membership, params, folded,
                  num_graphs, block_num, out_dim):
    # embedding sum over feature columns (gather stays in plain JAX)
    x = params["emb"][0][x_tokens[:, 0]]
    for i in range(1, x_tokens.shape[1]):
        x = x + params["emb"][i][x_tokens[:, i]]

    # Graph-conv blocks do NOT depend on the attention outputs (dense connection
    # only accumulates block_input + xg), so all of them are computed up front.
    block_input = x
    xgs, block_inputs = [], []
    for i in range(block_num):
        xg = graph_conv(block_input, edges, params["gc_w"][i], params["gc_b"][i])
        xgs.append(xg)
        block_input = block_input + xg
        block_inputs.append(block_input)

    # lane-dense tiles fed to the single fused kernel
    xcat = jnp.concatenate([x] + xgs, axis=1)             # (N, (B+1)*D)
    bicat = jnp.concatenate(block_inputs, axis=1)         # (N, B*D)

    memb_nt = (membership[:, None] == jnp.arange(num_graphs)[None, :]
               ).astype(jnp.float32)                      # (N, G)
    memb_gn = memb_nt.T                                   # (G, N) for matmul sum-pool

    d = x.shape[1]
    logits, graphs = fused_attention_readout_mlp(
        xcat, bicat, memb_nt, memb_gn, folded, block_num, d, out_dim)
    return logits, graphs


# ----------------------------------------------------------------------------
# Deterministic parameter init (same structure / semantics as before)
# ----------------------------------------------------------------------------
def _linear(key, out_d, in_d):
    w = jax.random.normal(key, (out_d, in_d), jnp.float32) * (1.0 / math.sqrt(in_d))
    b = jnp.zeros((out_d,), jnp.float32)
    return w, b


def init_params(key, feature_dims, input_dim, hidden_dim, output_dim, block_num):
    d = input_dim
    keys = jax.random.split(key, 4 + len(feature_dims) + block_num * 8)
    ki = iter(keys)

    emb = [jax.random.normal(next(ki), (fd, d), jnp.float32) * 0.1 for fd in feature_dims]

    gc_w, gc_b = [], []
    att = []
    for i in range(block_num):
        w, b = _linear(next(ki), d, d)
        gc_w.append(w); gc_b.append(b)
        c_in = (i + 2) * d
        w_bn, b_bn = _linear(next(ki), d, c_in)
        w_q, b_q = _linear(next(ki), ATT_DIM, d)
        w_k, b_k = _linear(next(ki), ATT_DIM, d)
        w_v, b_v = _linear(next(ki), d, d)
        att.append(dict(
            gn_bn_g=jnp.ones((c_in,), jnp.float32), gn_bn_b=jnp.zeros((c_in,), jnp.float32),
            w_bn=w_bn, b_bn=b_bn,
            gn_q_g=jnp.ones((d,), jnp.float32), gn_q_b=jnp.zeros((d,), jnp.float32),
            w_q=w_q, b_q=b_q,
            gn_k_g=jnp.ones((d,), jnp.float32), gn_k_b=jnp.zeros((d,), jnp.float32),
            w_k=w_k, b_k=b_k,
            gn_v_g=jnp.ones((d,), jnp.float32), gn_v_b=jnp.zeros((d,), jnp.float32),
            w_v=w_v, b_v=b_v,
            ln_g=jnp.ones((d,), jnp.float32), ln_b=jnp.zeros((d,), jnp.float32),
        ))

    readout_dim = d * (block_num + 1)                        # pyramid_feature=True
    classifier_dim = d                                       # classifier_dim defaults to input_dim
    # NOTE: bn1 has num_features=hidden_dim in the PyTorch module, so the module only
    # runs when classifier_dim == hidden_dim; we pick hidden_dim == input_dim accordingly.
    assert hidden_dim == classifier_dim
    w0, b0 = _linear(next(ki), hidden_dim, readout_dim)
    w1, b1 = _linear(next(ki), classifier_dim, hidden_dim)
    w2, b2 = _linear(next(ki), output_dim, classifier_dim)
    mlp = dict(
        w0=w0, b0=b0,
        g0=jnp.ones((hidden_dim,), jnp.float32), be0=jnp.zeros((hidden_dim,), jnp.float32),
        rm0=jnp.zeros((hidden_dim,), jnp.float32), rv0=jnp.ones((hidden_dim,), jnp.float32),
        w1=w1, b1=b1,
        g1=jnp.ones((hidden_dim,), jnp.float32), be1=jnp.zeros((hidden_dim,), jnp.float32),
        rm1=jnp.zeros((hidden_dim,), jnp.float32), rv1=jnp.ones((hidden_dim,), jnp.float32),
        w2=w2, b2=b2,
    )
    return dict(emb=emb, gc_w=gc_w, gc_b=gc_b, att=att, mlp=mlp)


# ----------------------------------------------------------------------------
if __name__ == "__main__":
    key = jax.random.PRNGKey(0)
    D = 32           # input_dim
    HIDDEN = 32      # hidden_dim (== classifier_dim == input_dim, see note above)
    OUT = 2          # output_dim (class num)
    BLOCKS = 3       # block_num
    N = 16           # number of nodes in the batch
    G = 2            # number of graphs
    E = 40           # number of edges
    feature_dims = [9, 7]

    kp, kx0, kx1, ke0, ke1 = jax.random.split(key, 5)
    params = init_params(kp, feature_dims, D, HIDDEN, OUT, BLOCKS)
    folded = fold_and_pack_params(params, D, BLOCKS)        # host-side fold, done once

    x_tokens = jnp.stack(
        [jax.random.randint(kx0, (N,), 0, feature_dims[0]),
         jax.random.randint(kx1, (N,), 0, feature_dims[1])], axis=1).astype(jnp.int32)
    edges = jnp.stack(
        [jax.random.randint(ke0, (E,), 0, N),
         jax.random.randint(ke1, (E,), 0, N)], axis=0).astype(jnp.int32)
    membership = jnp.concatenate(
        [jnp.zeros((N // 2,), jnp.int32), jnp.ones((N - N // 2,), jnp.int32)])

    forward = jax.jit(model_forward, static_argnums=(5, 6, 7))
    logits, graphs = forward(x_tokens, edges, membership, params, folded, G, BLOCKS, OUT)
    logits = jax.block_until_ready(logits)
    graphs = jax.block_until_ready(graphs)
    assert logits.shape == (G, OUT)
    assert graphs.shape == (G, D * (BLOCKS + 1))
    print("KERNEL_OK")
</pallas_src>

<mosaic_0001>
module attributes {stable_mosaic.version = 11 : i64} {
  func.func @kernel(%arg0: memref<16x128xf32, #tpu.memory_space<vmem>>, %arg1: memref<16x96xf32, #tpu.memory_space<vmem>>, %arg2: memref<16x2xf32, #tpu.memory_space<vmem>>, %arg3: memref<2x16xf32, #tpu.memory_space<vmem>>, %arg4: memref<128x96xf32, #tpu.memory_space<vmem>>, %arg5: memref<1x96xf32, #tpu.memory_space<vmem>>, %arg6: memref<96x864xf32, #tpu.memory_space<vmem>>, %arg7: memref<1x864xf32, #tpu.memory_space<vmem>>, %arg8: memref<3x32xf32, #tpu.memory_space<vmem>>, %arg9: memref<3x32xf32, #tpu.memory_space<vmem>>, %arg10: memref<128x32xf32, #tpu.memory_space<vmem>>, %arg11: memref<1x32xf32, #tpu.memory_space<vmem>>, %arg12: memref<32x32xf32, #tpu.memory_space<vmem>>, %arg13: memref<1x32xf32, #tpu.memory_space<vmem>>, %arg14: memref<32x128xf32, #tpu.memory_space<vmem>>, %arg15: memref<1x128xf32, #tpu.memory_space<vmem>>, %arg16: memref<2x128xf32, #tpu.memory_space<vmem>>, %arg17: memref<2x128xf32, #tpu.memory_space<vmem>>) attributes {dimension_semantics = [], scalar_prefetch = 0 : i64, scratch_operands = 0 : i64, tpu.core_type = #tpu.core_type<tc>} {
    %c0 = arith.constant 0 : index
    %c0_0 = arith.constant 0 : index
    %0 = vector.load %arg0[%c0, %c0_0] : memref<16x128xf32, #tpu.memory_space<vmem>>, vector<16x128xf32>
    %cst = arith.constant dense<0.000000e+00> : vector<128xf32>
    %1 = vector.multi_reduction <add>, %0, %cst [0] : vector<16x128xf32> to vector<128xf32>
    %2 = vector.shape_cast %1 : vector<128xf32> to vector<1x128xf32>
    %cst_1 = arith.constant 1.600000e+01 : f32
    %3 = vector.broadcast %cst_1 : f32 to vector<1x128xf32>
    %4 = arith.divf %2, %3 : vector<1x128xf32>
    %5 = vector.broadcast %4 : vector<1x128xf32> to vector<16x128xf32>
    %6 = arith.subf %0, %5 : vector<16x128xf32>
    %7 = arith.mulf %6, %6 : vector<16x128xf32>
    %cst_2 = arith.constant dense<0.000000e+00> : vector<128xf32>
    %8 = vector.multi_reduction <add>, %7, %cst_2 [0] : vector<16x128xf32> to vector<128xf32>
    %9 = vector.shape_cast %8 : vector<128xf32> to vector<1x128xf32>
    %cst_3 = arith.constant 1.600000e+01 : f32
    %10 = vector.broadcast %cst_3 : f32 to vector<1x128xf32>
    %11 = arith.divf %9, %10 : vector<1x128xf32>
    %12 = vector.broadcast %4 : vector<1x128xf32> to vector<16x128xf32>
    %13 = arith.subf %0, %12 : vector<16x128xf32>
    %cst_4 = arith.constant 9.99999974E-6 : f32
    %14 = vector.broadcast %cst_4 : f32 to vector<1x128xf32>
    %15 = arith.addf %11, %14 : vector<1x128xf32>
    %16 = math.rsqrt %15 : vector<1x128xf32>
    %17 = vector.broadcast %16 : vector<1x128xf32> to vector<16x128xf32>
    %18 = arith.mulf %13, %17 : vector<16x128xf32>
    %c0_5 = arith.constant 0 : index
    %c0_6 = arith.constant 0 : index
    %19 = vector.load %arg4[%c0_5, %c0_6] : memref<128x96xf32, #tpu.memory_space<vmem>>, vector<128x96xf32>
    %cst_7 = arith.constant dense<0.000000e+00> : vector<16x96xf32>
    %20 = tpu.matmul %18, %19, %cst_7 {dimension_numbers = #tpu.dot_dimension_numbers<[1], [0], [0], [1], [0, 0, 1, 1], [], []>} : vector<16x128xf32>, vector<128x96xf32>, vector<16x96xf32> -> vector<16x96xf32>
    %c0_8 = arith.constant 0 : index
    %c0_9 = arith.constant 0 : index
    %21 = vector.load %arg5[%c0_8, %c0_9] : memref<1x96xf32, #tpu.memory_space<vmem>>, vector<1x96xf32>
    %22 = vector.broadcast %21 : vector<1x96xf32> to vector<16x96xf32>
    %23 = arith.addf %20, %22 : vector<16x96xf32>
    %cst_10 = arith.constant 0.000000e+00 : f32
    %24 = vector.broadcast %cst_10 : f32 to vector<16x96xf32>
    %25 = arith.cmpf ogt, %23, %24 : vector<16x96xf32>
    %cst_11 = arith.constant 1.000000e-01 : f32
    %26 = vector.broadcast %cst_11 : f32 to vector<16x96xf32>
    %27 = arith.mulf %26, %23 : vector<16x96xf32>
    %28 = arith.select %25, %23, %27 : vector<16x96xi1>, vector<16x96xf32>
    %cst_12 = arith.constant dense<0.000000e+00> : vector<96xf32>
    %29 = vector.multi_reduction <add>, %28, %cst_12 [0] : vector<16x96xf32> to vector<96xf32>
    %30 = vector.shape_cast %29 : vector<96xf32> to vector<1x96xf32>
    %cst_13 = arith.constant 1.600000e+01 : f32
    %31 = vector.broadcast %cst_13 : f32 to vector<1x96xf32>
    %32 = arith.divf %30, %31 : vector<1x96xf32>
    %33 = vector.broadcast %32 : vector<1x96xf32> to vector<16x96xf32>
    %34 = arith.subf %28, %33 : vector<16x96xf32>
    %35 = arith.mulf %34, %34 : vector<16x96xf32>
    %cst_14 = arith.constant dense<0.000000e+00> : vector<96xf32>
    %36 = vector.multi_reduction <add>, %35, %cst_14 [0] : vector<16x96xf32> to vector<96xf32>
    %37 = vector.shape_cast %36 : vector<96xf32> to vector<1x96xf32>
    %cst_15 = arith.constant 1.600000e+01 : f32
    %38 = vector.broadcast %cst_15 : f32 to vector<1x96xf32>
    %39 = arith.divf %37, %38 : vector<1x96xf32>
    %40 = vector.broadcast %32 : vector<1x96xf32> to vector<16x96xf32>
    %41 = arith.subf %28, %40 : vector<16x96xf32>
    %cst_16 = arith.constant 9.99999974E-6 : f32
    %42 = vector.broadcast %cst_16 : f32 to vector<1x96xf32>
    %43 = arith.addf %39, %42 : vector<1x96xf32>
    %44 = math.rsqrt %43 : vector<1x96xf32>
    %45 = vector.broadcast %44 : vector<1x96xf32> to vector<16x96xf32>
    %46 = arith.mulf %41, %45 : vector<16x96xf32>
    %c0_17 = arith.constant 0 : index
    %c0_18 = arith.constant 0 : index
    %47 = vector.load %arg6[%c0_17, %c0_18] : memref<96x864xf32, #tpu.memory_space<vmem>>, vector<96x864xf32>
    %cst_19 = arith.constant dense<0.000000e+00> : vector<16x864xf32>
    %48 = tpu.matmul %46, %47, %cst_19 {dimension_numbers = #tpu.dot_dimension_numbers<[1], [0], [0], [1], [0, 0, 1, 1], [], []>} : vector<16x96xf32>, vector<96x864xf32>, vector<16x864xf32> -> vector<16x864xf32>
    %c0_20 = arith.constant 0 : index
    %c0_21 = arith.constant 0 : index
    %49 = vector.load %arg7[%c0_20, %c0_21] : memref<1x864xf32, #tpu.memory_space<vmem>>, vector<1x864xf32>
    %50 = vector.broadcast %49 : vector<1x864xf32> to vector<16x864xf32>
    %51 = arith.addf %48, %50 : vector<16x864xf32>
    %cst_22 = arith.constant 0.000000e+00 : f32
    %52 = vector.broadcast %cst_22 : f32 to vector<16x864xf32>
    %53 = arith.cmpf ogt, %51, %52 : vector<16x864xf32>
    %cst_23 = arith.constant 1.000000e-01 : f32
    %54 = vector.broadcast %cst_23 : f32 to vector<16x864xf32>
    %55 = arith.mulf %54, %51 : vector<16x864xf32>
    %56 = arith.select %53, %51, %55 : vector<16x864xi1>, vector<16x864xf32>
    %c0_24 = arith.constant 0 : index
    %c0_25 = arith.constant 0 : index
    %57 = vector.load %arg1[%c0_24, %c0_25] : memref<16x96xf32, #tpu.memory_space<vmem>>, vector<16x96xf32>
    %58 = vector.extract_strided_slice %56 {offsets = [0, 0], sizes = [16, 128], strides = [1, 1]} : vector<16x864xf32> to vector<16x128xf32>
    %59 = vector.extract_strided_slice %56 {offsets = [0, 384], sizes = [16, 128], strides = [1, 1]} : vector<16x864xf32> to vector<16x128xf32>
    %60 = vector.extract_strided_slice %56 {offsets = [0, 768], sizes = [16, 32], strides = [1, 1]} : vector<16x864xf32> to vector<16x32xf32>
    %cst_26 = arith.constant dense<0.000000e+00> : vector<16x16xf32>
    %61 = tpu.matmul %59, %58, %cst_26 {dimension_numbers = #tpu.dot_dimension_numbers<[1], [1], [0], [0], [0, 0, 1, 0], [], []>} : vector<16x128xf32>, vector<16x128xf32>, vector<16x16xf32> -> vector<16x16xf32>
    %cst_27 = arith.constant dense<0xFF800000> : vector<16xf32>
    %62 = vector.multi_reduction <maximumf>, %61, %cst_27 [1] : vector<16x16xf32> to vector<16xf32>
    %63 = vector.shape_cast %62 : vector<16xf32> to vector<16x1xf32>
    %64 = vector.broadcast %63 : vector<16x1xf32> to vector<16x16xf32>
    %65 = arith.subf %61, %64 : vector<16x16xf32>
    %66 = math.exp %65 : vector<16x16xf32>
    %cst_28 = arith.constant dense<0.000000e+00> : vector<16xf32>
    %67 = vector.multi_reduction <add>, %66, %cst_28 [1] : vector<16x16xf32> to vector<16xf32>
    %68 = vector.shape_cast %67 : vector<16xf32> to vector<16x1xf32>
    %69 = vector.broadcast %68 : vector<16x1xf32> to vector<16x16xf32>
    %70 = arith.divf %66, %69 : vector<16x16xf32>
    %cst_29 = arith.constant dense<0.000000e+00> : vector<16x32xf32>
    %71 = tpu.matmul %70, %60, %cst_29 {dimension_numbers = #tpu.dot_dimension_numbers<[1], [0], [0], [1], [0, 0, 1, 1], [], []>} : vector<16x16xf32>, vector<16x32xf32>, vector<16x32xf32> -> vector<16x32xf32>
    %cst_30 = arith.constant 0.000000e+00 : f32
    %72 = vector.broadcast %cst_30 : f32 to vector<16x32xf32>
    %73 = arith.cmpf ogt, %71, %72 : vector<16x32xf32>
    %cst_31 = arith.constant 1.000000e-01 : f32
    %74 = vector.broadcast %cst_31 : f32 to vector<16x32xf32>
    %75 = arith.mulf %74, %71 : vector<16x32xf32>
    %76 = arith.select %73, %71, %75 : vector<16x32xi1>, vector<16x32xf32>
    %cst_32 = arith.constant dense<0.000000e+00> : vector<16xf32>
    %77 = vector.multi_reduction <add>, %76, %cst_32 [1] : vector<16x32xf32> to vector<16xf32>
    %78 = vector.shape_cast %77 : vector<16xf32> to vector<16x1xf32>
    %cst_33 = arith.constant 3.200000e+01 : f32
    %79 = vector.broadcast %cst_33 : f32 to vector<16x1xf32>
    %80 = arith.divf %78, %79 : vector<16x1xf32>
    %81 = vector.broadcast %80 : vector<16x1xf32> to vector<16x32xf32>
    %82 = arith.subf %76, %81 : vector<16x32xf32>
    %83 = arith.mulf %82, %82 : vector<16x32xf32>
    %cst_34 = arith.constant dense<0.000000e+00> : vector<16xf32>
    %84 = vector.multi_reduction <add>, %83, %cst_34 [1] : vector<16x32xf32> to vector<16xf32>
    %85 = vector.shape_cast %84 : vector<16xf32> to vector<16x1xf32>
    %cst_35 = arith.constant 3.200000e+01 : f32
    %86 = vector.broadcast %cst_35 : f32 to vector<16x1xf32>
    %87 = arith.divf %85, %86 : vector<16x1xf32>
    %88 = vector.broadcast %80 : vector<16x1xf32> to vector<16x32xf32>
    %89 = arith.subf %76, %88 : vector<16x32xf32>
    %cst_36 = arith.constant 9.99999974E-6 : f32
    %90 = vector.broadcast %cst_36 : f32 to vector<16x1xf32>
    %91 = arith.addf %87, %90 : vector<16x1xf32>
    %92 = math.rsqrt %91 : vector<16x1xf32>
    %93 = vector.broadcast %92 : vector<16x1xf32> to vector<16x32xf32>
    %94 = arith.mulf %89, %93 : vector<16x32xf32>
    %c0_37 = arith.constant 0 : index
    %c0_38 = arith.constant 0 : index
    %95 = vector.load %arg8[%c0_37, %c0_38] : memref<3x32xf32, #tpu.memory_space<vmem>>, vector<1x32xf32>
    %96 = vector.broadcast %95 : vector<1x32xf32> to vector<16x32xf32>
    %97 = arith.mulf %94, %96 : vector<16x32xf32>
    %c0_39 = arith.constant 0 : index
    %c0_40 = arith.constant 0 : index
    %98 = vector.load %arg9[%c0_39, %c0_40] : memref<3x32xf32, #tpu.memory_space<vmem>>, vector<1x32xf32>
    %99 = vector.broadcast %98 : vector<1x32xf32> to vector<16x32xf32>
    %100 = arith.addf %97, %99 : vector<16x32xf32>
    %101 = vector.extract_strided_slice %57 {offsets = [0, 0], sizes = [16, 32], strides = [1, 1]} : vector<16x96xf32> to vector<16x32xf32>
    %102 = arith.addf %101, %100 : vector<16x32xf32>
    %103 = vector.extract_strided_slice %56 {offsets = [0, 128], sizes = [16, 128], strides = [1, 1]} : vector<16x864xf32> to vector<16x128xf32>
    %104 = vector.extract_strided_slice %56 {offsets = [0, 512], sizes = [16, 128], strides = [1, 1]} : vector<16x864xf32> to vector<16x128xf32>
    %105 = vector.extract_strided_slice %56 {offsets = [0, 800], sizes = [16, 32], strides = [1, 1]} : vector<16x864xf32> to vector<16x32xf32>
    %cst_41 = arith.constant dense<0.000000e+00> : vector<16x16xf32>
    %106 = tpu.matmul %104, %103, %cst_41 {dimension_numbers = #tpu.dot_dimension_numbers<[1], [1], [0], [0], [0, 0, 1, 0], [], []>} : vector<16x128xf32>, vector<16x128xf32>, vector<16x16xf32> -> vector<16x16xf32>
    %cst_42 = arith.constant dense<0xFF800000> : vector<16xf32>
    %107 = vector.multi_reduction <maximumf>, %106, %cst_42 [1] : vector<16x16xf32> to vector<16xf32>
    %108 = vector.shape_cast %107 : vector<16xf32> to vector<16x1xf32>
    %109 = vector.broadcast %108 : vector<16x1xf32> to vector<16x16xf32>
    %110 = arith.subf %106, %109 : vector<16x16xf32>
    %111 = math.exp %110 : vector<16x16xf32>
    %cst_43 = arith.constant dense<0.000000e+00> : vector<16xf32>
    %112 = vector.multi_reduction <add>, %111, %cst_43 [1] : vector<16x16xf32> to vector<16xf32>
    %113 = vector.shape_cast %112 : vector<16xf32> to vector<16x1xf32>
    %114 = vector.broadcast %113 : vector<16x1xf32> to vector<16x16xf32>
    %115 = arith.divf %111, %114 : vector<16x16xf32>
    %cst_44 = arith.constant dense<0.000000e+00> : vector<16x32xf32>
    %116 = tpu.matmul %115, %105, %cst_44 {dimension_numbers = #tpu.dot_dimension_numbers<[1], [0], [0], [1], [0, 0, 1, 1], [], []>} : vector<16x16xf32>, vector<16x32xf32>, vector<16x32xf32> -> vector<16x32xf32>
    %cst_45 = arith.constant 0.000000e+00 : f32
    %117 = vector.broadcast %cst_45 : f32 to vector<16x32xf32>
    %118 = arith.cmpf ogt, %116, %117 : vector<16x32xf32>
    %cst_46 = arith.constant 1.000000e-01 : f32
    %119 = vector.broadcast %cst_46 : f32 to vector<16x32xf32>
    %120 = arith.mulf %119, %116 : vector<16x32xf32>
    %121 = arith.select %118, %116, %120 : vector<16x32xi1>, vector<16x32xf32>
    %cst_47 = arith.constant dense<0.000000e+00> : vector<16xf32>
    %122 = vector.multi_reduction <add>, %121, %cst_47 [1] : vector<16x32xf32> to vector<16xf32>
    %123 = vector.shape_cast %122 : vector<16xf32> to vector<16x1xf32>
    %cst_48 = arith.constant 3.200000e+01 : f32
    %124 = vector.broadcast %cst_48 : f32 to vector<16x1xf32>
    %125 = arith.divf %123, %124 : vector<16x1xf32>
    %126 = vector.broadcast %125 : vector<16x1xf32> to vector<16x32xf32>
    %127 = arith.subf %121, %126 : vector<16x32xf32>
    %128 = arith.mulf %127, %127 : vector<16x32xf32>
    %cst_49 = arith.constant dense<0.000000e+00> : vector<16xf32>
    %129 = vector.multi_reduction <add>, %128, %cst_49 [1] : vector<16x32xf32> to vector<16xf32>
    %130 = vector.shape_cast %129 : vector<16xf32> to vector<16x1xf32>
    %cst_50 = arith.constant 3.200000e+01 : f32
    %131 = vector.broadcast %cst_50 : f32 to vector<16x1xf32>
    %132 = arith.divf %130, %131 : vector<16x1xf32>
    %133 = vector.broadcast %125 : vector<16x1xf32> to vector<16x32xf32>
    %134 = arith.subf %121, %133 : vector<16x32xf32>
    %cst_51 = arith.constant 9.99999974E-6 : f32
    %135 = vector.broadcast %cst_51 : f32 to vector<16x1xf32>
    %136 = arith.addf %132, %135 : vector<16x1xf32>
    %137 = math.rsqrt %136 : vector<16x1xf32>
    %138 = vector.broadcast %137 : vector<16x1xf32> to vector<16x32xf32>
    %139 = arith.mulf %134, %138 : vector<16x32xf32>
    %c1 = arith.constant 1 : index
    %c0_52 = arith.constant 0 : index
    %140 = vector.load %arg8[%c1, %c0_52] : memref<3x32xf32, #tpu.memory_space<vmem>>, vector<1x32xf32>
    %141 = vector.broadcast %140 : vector<1x32xf32> to vector<16x32xf32>
    %142 = arith.mulf %139, %141 : vector<16x32xf32>
    %c1_53 = arith.constant 1 : index
    %c0_54 = arith.constant 0 : index
    %143 = vector.load %arg9[%c1_53, %c0_54] : memref<3x32xf32, #tpu.memory_space<vmem>>, vector<1x32xf32>
    %144 = vector.broadcast %143 : vector<1x32xf32> to vector<16x32xf32>
    %145 = arith.addf %142, %144 : vector<16x32xf32>
    %146 = vector.extract_strided_slice %57 {offsets = [0, 32], sizes = [16, 32], strides = [1, 1]} : vector<16x96xf32> to vector<16x32xf32>
    %147 = arith.addf %146, %145 : vector<16x32xf32>
    %148 = vector.extract_strided_slice %56 {offsets = [0, 256], sizes = [16, 128], strides = [1, 1]} : vector<16x864xf32> to vector<16x128xf32>
    %149 = vector.extract_strided_slice %56 {offsets = [0, 640], sizes = [16, 128], strides = [1, 1]} : vector<16x864xf32> to vector<16x128xf32>
    %150 = vector.extract_strided_slice %56 {offsets = [0, 832], sizes = [16, 32], strides = [1, 1]} : vector<16x864xf32> to vector<16x32xf32>
    %cst_55 = arith.constant dense<0.000000e+00> : vector<16x16xf32>
    %151 = tpu.matmul %149, %148, %cst_55 {dimension_numbers = #tpu.dot_dimension_numbers<[1], [1], [0], [0], [0, 0, 1, 0], [], []>} : vector<16x128xf32>, vector<16x128xf32>, vector<16x16xf32> -> vector<16x16xf32>
    %cst_56 = arith.constant dense<0xFF800000> : vector<16xf32>
    %152 = vector.multi_reduction <maximumf>, %151, %cst_56 [1] : vector<16x16xf32> to vector<16xf32>
    %153 = vector.shape_cast %152 : vector<16xf32> to vector<16x1xf32>
    %154 = vector.broadcast %153 : vector<16x1xf32> to vector<16x16xf32>
    %155 = arith.subf %151, %154 : vector<16x16xf32>
    %156 = math.exp %155 : vector<16x16xf32>
    %cst_57 = arith.constant dense<0.000000e+00> : vector<16xf32>
    %157 = vector.multi_reduction <add>, %156, %cst_57 [1] : vector<16x16xf32> to vector<16xf32>
    %158 = vector.shape_cast %157 : vector<16xf32> to vector<16x1xf32>
    %159 = vector.broadcast %158 : vector<16x1xf32> to vector<16x16xf32>
    %160 = arith.divf %156, %159 : vector<16x16xf32>
    %cst_58 = arith.constant dense<0.000000e+00> : vector<16x32xf32>
    %161 = tpu.matmul %160, %150, %cst_58 {dimension_numbers = #tpu.dot_dimension_numbers<[1], [0], [0], [1], [0, 0, 1, 1], [], []>} : vector<16x16xf32>, vector<16x32xf32>, vector<16x32xf32> -> vector<16x32xf32>
    %cst_59 = arith.constant 0.000000e+00 : f32
    %162 = vector.broadcast %cst_59 : f32 to vector<16x32xf32>
    %163 = arith.cmpf ogt, %161, %162 : vector<16x32xf32>
    %cst_60 = arith.constant 1.000000e-01 : f32
    %164 = vector.broadcast %cst_60 : f32 to vector<16x32xf32>
    %165 = arith.mulf %164, %161 : vector<16x32xf32>
    %166 = arith.select %163, %161, %165 : vector<16x32xi1>, vector<16x32xf32>
    %cst_61 = arith.constant dense<0.000000e+00> : vector<16xf32>
    %167 = vector.multi_reduction <add>, %166, %cst_61 [1] : vector<16x32xf32> to vector<16xf32>
    %168 = vector.shape_cast %167 : vector<16xf32> to vector<16x1xf32>
    %cst_62 = arith.constant 3.200000e+01 : f32
    %169 = vector.broadcast %cst_62 : f32 to vector<16x1xf32>
    %170 = arith.divf %168, %169 : vector<16x1xf32>
    %171 = vector.broadcast %170 : vector<16x1xf32> to vector<16x32xf32>
    %172 = arith.subf %166, %171 : vector<16x32xf32>
    %173 = arith.mulf %172, %172 : vector<16x32xf32>
    %cst_63 = arith.constant dense<0.000000e+00> : vector<16xf32>
    %174 = vector.multi_reduction <add>, %173, %cst_63 [1] : vector<16x32xf32> to vector<16xf32>
    %175 = vector.shape_cast %174 : vector<16xf32> to vector<16x1xf32>
    %cst_64 = arith.constant 3.200000e+01 : f32
    %176 = vector.broadcast %cst_64 : f32 to vector<16x1xf32>
    %177 = arith.divf %175, %176 : vector<16x1xf32>
    %178 = vector.broadcast %170 : vector<16x1xf32> to vector<16x32xf32>
    %179 = arith.subf %166, %178 : vector<16x32xf32>
    %cst_65 = arith.constant 9.99999974E-6 : f32
    %180 = vector.broadcast %cst_65 : f32 to vector<16x1xf32>
    %181 = arith.addf %177, %180 : vector<16x1xf32>
    %182 = math.rsqrt %181 : vector<16x1xf32>
    %183 = vector.broadcast %182 : vector<16x1xf32> to vector<16x32xf32>
    %184 = arith.mulf %179, %183 : vector<16x32xf32>
    %c2 = arith.constant 2 : index
    %c0_66 = arith.constant 0 : index
    %185 = vector.load %arg8[%c2, %c0_66] : memref<3x32xf32, #tpu.memory_space<vmem>>, vector<1x32xf32>
    %186 = vector.broadcast %185 : vector<1x32xf32> to vector<16x32xf32>
    %187 = arith.mulf %184, %186 : vector<16x32xf32>
    %c2_67 = arith.constant 2 : index
    %c0_68 = arith.constant 0 : index
    %188 = vector.load %arg9[%c2_67, %c0_68] : memref<3x32xf32, #tpu.memory_space<vmem>>, vector<1x32xf32>
    %189 = vector.broadcast %188 : vector<1x32xf32> to vector<16x32xf32>
    %190 = arith.addf %187, %189 : vector<16x32xf32>
    %191 = vector.extract_strided_slice %57 {offsets = [0, 64], sizes = [16, 32], strides = [1, 1]} : vector<16x96xf32> to vector<16x32xf32>
    %192 = arith.addf %191, %190 : vector<16x32xf32>
    %193 = vector.extract_strided_slice %0 {offsets = [0, 0], sizes = [16, 32], strides = [1, 1]} : vector<16x128xf32> to vector<16x32xf32>
    %194 = tpu.concatenate %193, %102, %147, %192 in 1 : vector<16x32xf32>, vector<16x32xf32>, vector<16x32xf32>, vector<16x32xf32> -> vector<16x128xf32>
    %c0_69 = arith.constant 0 : index
    %c0_70 = arith.constant 0 : index
    %195 = vector.load %arg3[%c0_69, %c0_70] : memref<2x16xf32, #tpu.memory_space<vmem>>, vector<2x16xf32>
    %cst_71 = arith.constant dense<0.000000e+00> : vector<2x128xf32>
    %196 = tpu.matmul %195, %194, %cst_71 {dimension_numbers = #tpu.dot_dimension_numbers<[1], [0], [0], [1], [0, 0, 1, 1], [], []>} : vector<2x16xf32>, vector<16x128xf32>, vector<2x128xf32> -> vector<2x128xf32>
    %c0_72 = arith.constant 0 : index
    %c0_73 = arith.constant 0 : index
    %197 = vector.load %arg2[%c0_72, %c0_73] : memref<16x2xf32, #tpu.memory_space<vmem>>, vector<16x2xf32>
    %198 = vector.extract_strided_slice %197 {offsets = [0, 0], sizes = [16, 1], strides = [1, 1]} : vector<16x2xf32> to vector<16x1xf32>
    %cst_74 = arith.constant 5.000000e-01 : f32
    %199 = vector.broadcast %cst_74 : f32 to vector<16x1xf32>
    %200 = arith.cmpf ogt, %198, %199 : vector<16x1xf32>
    %cst_75 = arith.constant -1.000000e+30 : f32
    %201 = vector.shape_cast %200 : vector<16x1xi1> to vector<16x1xi1>
    %202 = vector.broadcast %201 : vector<16x1xi1> to vector<16x128xi1>
    %203 = vector.broadcast %cst_75 : f32 to vector<16x128xf32>
    %204 = arith.select %202, %194, %203 : vector<16x128xi1>, vector<16x128xf32>
    %cst_76 = arith.constant dense<0xFF800000> : vector<128xf32>
    %205 = vector.multi_reduction <maximumf>, %204, %cst_76 [0] : vector<16x128xf32> to vector<128xf32>
    %206 = vector.shape_cast %205 : vector<128xf32> to vector<1x128xf32>
    %cst_77 = arith.constant -5.000000e+29 : f32
    %207 = vector.broadcast %cst_77 : f32 to vector<1x128xf32>
    %208 = arith.cmpf ole, %206, %207 : vector<1x128xf32>
    %cst_78 = arith.constant 0.000000e+00 : f32
    %209 = vector.broadcast %cst_78 : f32 to vector<1x128xf32>
    %210 = arith.select %208, %209, %206 : vector<1x128xi1>, vector<1x128xf32>
    %211 = vector.extract_strided_slice %197 {offsets = [0, 1], sizes = [16, 1], strides = [1, 1]} : vector<16x2xf32> to vector<16x1xf32>
    %cst_79 = arith.constant 5.000000e-01 : f32
    %212 = vector.broadcast %cst_79 : f32 to vector<16x1xf32>
    %213 = arith.cmpf ogt, %211, %212 : vector<16x1xf32>
    %cst_80 = arith.constant -1.000000e+30 : f32
    %214 = vector.shape_cast %213 : vector<16x1xi1> to vector<16x1xi1>
    %215 = vector.broadcast %214 : vector<16x1xi1> to vector<16x128xi1>
    %216 = vector.broadcast %cst_80 : f32 to vector<16x128xf32>
    %217 = arith.select %215, %194, %216 : vector<16x128xi1>, vector<16x128xf32>
    %cst_81 = arith.constant dense<0xFF800000> : vector<128xf32>
    %218 = vector.multi_reduction <maximumf>, %217, %cst_81 [0] : vector<16x128xf32> to vector<128xf32>
    %219 = vector.shape_cast %218 : vector<128xf32> to vector<1x128xf32>
    %cst_82 = arith.constant -5.000000e+29 : f32
    %220 = vector.broadcast %cst_82 : f32 to vector<1x128xf32>
    %221 = arith.cmpf ole, %219, %220 : vector<1x128xf32>
    %cst_83 = arith.constant 0.000000e+00 : f32
    %222 = vector.broadcast %cst_83 : f32 to vector<1x128xf32>
    %223 = arith.select %221, %222, %219 : vector<1x128xi1>, vector<1x128xf32>
    %224 = tpu.concatenate %210, %223 in 0 : vector<1x128xf32>, vector<1x128xf32> -> vector<2x128xf32>
    %225 = arith.addf %196, %224 : vector<2x128xf32>
    %c0_84 = arith.constant 0 : index
    %c0_85 = arith.constant 0 : index
    %226 = vector.load %arg17[%c0_84, %c0_85] : memref<2x128xf32, #tpu.memory_space<vmem>>, vector<2x128xf32>
    tpu.vector_store %arg17[%c0_84, %c0_85], %225 {strides = array<i32>} : memref<2x128xf32, #tpu.memory_space<vmem>>, vector<2x128xf32>,
    %c0_86 = arith.constant 0 : index
    %c0_87 = arith.constant 0 : index
    %227 = vector.load %arg10[%c0_86, %c0_87] : memref<128x32xf32, #tpu.memory_space<vmem>>, vector<128x32xf32>
    %cst_88 = arith.constant dense<0.000000e+00> : vector<2x32xf32>
    %228 = tpu.matmul %225, %227, %cst_88 {dimension_numbers = #tpu.dot_dimension_numbers<[1], [0], [0], [1], [0, 0, 1, 1], [], []>} : vector<2x128xf32>, vector<128x32xf32>, vector<2x32xf32> -> vector<2x32xf32>
    %c0_89 = arith.constant 0 : index
    %c0_90 = arith.constant 0 : index
    %229 = vector.load %arg11[%c0_89, %c0_90] : memref<1x32xf32, #tpu.memory_space<vmem>>, vector<1x32xf32>
    %230 = vector.broadcast %229 : vector<1x32xf32> to vector<2x32xf32>
    %231 = arith.addf %228, %230 : vector<2x32xf32>
    %cst_91 = arith.constant 5.000000e-01 : f32
    %232 = vector.broadcast %cst_91 : f32 to vector<2x32xf32>
    %233 = arith.mulf %232, %231 : vector<2x32xf32>
    %cst_92 = arith.constant 0.707106769 : f32
    %234 = vector.broadcast %cst_92 : f32 to vector<2x32xf32>
    %235 = arith.mulf %231, %234 : vector<2x32xf32>
    %236 = math.erf %235 : vector<2x32xf32>
    %cst_93 = arith.constant 1.000000e+00 : f32
    %237 = vector.broadcast %cst_93 : f32 to vector<2x32xf32>
    %238 = arith.addf %237, %236 : vector<2x32xf32>
    %239 = arith.mulf %233, %238 : vector<2x32xf32>
    %c0_94 = arith.constant 0 : index
    %c0_95 = arith.constant 0 : index
    %240 = vector.load %arg12[%c0_94, %c0_95] : memref<32x32xf32, #tpu.memory_space<vmem>>, vector<32x32xf32>
    %cst_96 = arith.constant dense<0.000000e+00> : vector<2x32xf32>
    %241 = tpu.matmul %239, %240, %cst_96 {dimension_numbers = #tpu.dot_dimension_numbers<[1], [0], [0], [1], [0, 0, 1, 1], [], []>} : vector<2x32xf32>, vector<32x32xf32>, vector<2x32xf32> -> vector<2x32xf32>
    %c0_97 = arith.constant 0 : index
    %c0_98 = arith.constant 0 : index
    %242 = vector.load %arg13[%c0_97, %c0_98] : memref<1x32xf32, #tpu.memory_space<vmem>>, vector<1x32xf32>
    %243 = vector.broadcast %242 : vector<1x32xf32> to vector<2x32xf32>
    %244 = arith.addf %241, %243 : vector<2x32xf32>
    %cst_99 = arith.constant 5.000000e-01 : f32
    %245 = vector.broadcast %cst_99 : f32 to vector<2x32xf32>
    %246 = arith.mulf %245, %244 : vector<2x32xf32>
    %cst_100 = arith.constant 0.707106769 : f32
    %247 = vector.broadcast %cst_100 : f32 to vector<2x32xf32>
    %248 = arith.mulf %244, %247 : vector<2x32xf32>
    %249 = math.erf %248 : vector<2x32xf32>
    %cst_101 = arith.constant 1.000000e+00 : f32
    %250 = vector.broadcast %cst_101 : f32 to vector<2x32xf32>
    %251 = arith.addf %250, %249 : vector<2x32xf32>
    %252 = arith.mulf %246, %251 : vector<2x32xf32>
    %c0_102 = arith.constant 0 : index
    %c0_103 = arith.constant 0 : index
    %253 = vector.load %arg14[%c0_102, %c0_103] : memref<32x128xf32, #tpu.memory_space<vmem>>, vector<32x128xf32>
    %cst_104 = arith.constant dense<0.000000e+00> : vector<2x128xf32>
    %254 = tpu.matmul %252, %253, %cst_104 {dimension_numbers = #tpu.dot_dimension_numbers<[1], [0], [0], [1], [0, 0, 1, 1], [], []>} : vector<2x32xf32>, vector<32x128xf32>, vector<2x128xf32> -> vector<2x128xf32>
    %c0_105 = arith.constant 0 : index
    %c0_106 = arith.constant 0 : index
    %255 = vector.load %arg15[%c0_105, %c0_106] : memref<1x128xf32, #tpu.memory_space<vmem>>, vector<1x128xf32>
    %256 = vector.broadcast %255 : vector<1x128xf32> to vector<2x128xf32>
    %257 = arith.addf %254, %256 : vector<2x128xf32>
    %c0_107 = arith.constant 0 : index
    %c0_108 = arith.constant 0 : index
    %258 = vector.load %arg16[%c0_107, %c0_108] : memref<2x128xf32, #tpu.memory_space<vmem>>, vector<2x128xf32>
    tpu.vector_store %arg16[%c0_107, %c0_108], %257 {strides = array<i32>} : memref<2x128xf32, #tpu.memory_space<vmem>>, vector<2x128xf32>,
    return
  }
}

</mosaic_0001>

<bundles_post_ra>
// kernel: model_forward.1
= control target key start
LH: loop header
LB: loop body
LE: loop exit
PB: predicated region body
PF: predicated region fallthrough
CT: control target
= control target key end

     0   :  { %s3164_s0 = inlined_call_operand.vmem [shape: f32[16,128], index: 0, kind: input, shape index: {}]   ;;  %s3165_s1 = inlined_call_operand.vmem [shape: f32[16,96], index: 1, kind: input, shape index: {}]   ;;  %s3166_s2 = inlined_call_operand.vmem [shape: f32[16,2], index: 2, kind: input, shape index: {}]   ;;  %s3167_s3 = inlined_call_operand.vmem [shape: f32[2,16], index: 3, kind: input, shape index: {}]   ;;  %s3168_s4 = inlined_call_operand.vmem [shape: f32[128,96], index: 4, kind: input, shape index: {}]   ;;  %s3169_s5 = inlined_call_operand.vmem [shape: f32[1,96], index: 5, kind: input, shape index: {}]   ;;  %s3170_s6 = inlined_call_operand.vmem [shape: f32[96,864], index: 6, kind: input, shape index: {}]   ;;  %s3171_s7 = inlined_call_operand.vmem [shape: f32[1,864], index: 7, kind: input, shape index: {}]   ;;  %s3172_s8 = inlined_call_operand.vmem [shape: f32[3,32], index: 8, kind: input, shape index: {}]   ;;  %s3173_s9 = inlined_call_operand.vmem [shape: f32[3,32], index: 9, kind: input, shape index: {}]   ;;  %s3174_s10 = inlined_call_operand.vmem [shape: f32[128,32], index: 10, kind: input, shape index: {}]   ;;  %s3175_s11 = inlined_call_operand.vmem [shape: f32[1,32], index: 11, kind: input, shape index: {}]   ;;  %s3176_s12 = inlined_call_operand.vmem [shape: f32[32,32], index: 12, kind: input, shape index: {}]   ;;  %s3177_s13 = inlined_call_operand.vmem [shape: f32[1,32], index: 13, kind: input, shape index: {}]   ;;  %s3178_s14 = inlined_call_operand.vmem [shape: f32[32,128], index: 14, kind: input, shape index: {}]   ;;  %s3179_s15 = inlined_call_operand.vmem [shape: f32[1,128], index: 15, kind: input, shape index: {}]   ;;  %s3180_s16 = inlined_call_operand.hbm [shape: f32[2,128], index: 16, kind: output, shape index: {0}]   ;;  %s3181_s17 = inlined_call_operand.hbm [shape: f32[2,128], index: 17, kind: output, shape index: {1}]  }
   0x1   :  { %3184 = sst [smem:[#allocation8_spill]] %s3164_s0 }
   0x2   :  { %3185 = sst [smem:[#allocation9_spill]] %s3165_s1 }
   0x3   :  { %23 = vsyncpa [#allocation3], 0  ;;  %v84_v0 = vld [vmem:[%s3168_s4] sm:$0xff]  ;;  %v85_v1 = vld [vmem:[%s3168_s4 + $0x8] sm:$0xff]  ;;  %s3186_s23 = sld [smem:[#allocation8_spill]] }
   0x4   :  { %v86_v2 = vld [vmem:[%s3168_s4 + $0x10] sm:$0xff]  ;;  %v2138_v3 = vpack.c.bf16 %v85_v1, %v84_v0  ;;  %v87_v4 = vld [vmem:[%s3168_s4 + $0x18] sm:$0xff]  ;;  %v88_v6 = vld [vmem:[%s3168_s4 + $0x20] sm:$0xff] }
   0x5   :  { %v2142_v5 = vpack.c.bf16 %v87_v4, %v86_v2  ;;  %v89_v7 = vld [vmem:[%s3168_s4 + $0x28] sm:$0xff]  ;;  %v90_v11 = vld [vmem:[%s3168_s4 + $0x30] sm:$0xff]  ;;  %v91_v12 = vld [vmem:[%s3168_s4 + $0x38] sm:$0xff] }
   0x6   :  { %2139 = vmatprep.subr.bf16.mxu0 %v2138_v3  ;;  %v2146_v8 = vpack.c.bf16 %v89_v7, %v88_v6 }
   0x7   :  { %2141 = vmatpush3.bf16.msra.mxu0 %v2138_v3 }
   0x8   :  { %2143 = vmatprep.subr.bf16.mxu0 %v2142_v5 }
   0x9   :  { %v57_v9 = vld [vmem:[%s3186_s23] sm:$0xff]  ;;  %v58_v10 = vld [vmem:[%s3186_s23 + $0x8] sm:$0xff] }
   0xa   :  { %v59_v13 = vadd.f32 %v58_v10, %v57_v9 }
   0xb   :  { %24 = vsyncpa [#allocation5], 0  ;;  %2145 = vmatpush3.bf16.msra.mxu0 %v2142_v5  ;;  %v2150_v15 = vpack.c.bf16 %v91_v12, %v90_v11  ;;  %v92_v16 = vld [vmem:[%s3168_s4 + $0x40] sm:$0xff]  ;;  %v93_v17 = vld [vmem:[%s3168_s4 + $0x48] sm:$0xff]  ;;  %vm188_vm1 = vcmask 785408   ;;  %vm769_vm15 = vcmask 130048  }
   0xc   :  { %v60_v14 = vrot.slane %v59_v13, 4  ;;  %2147 = vmatprep.subr.bf16.mxu0 %v2146_v8  ;;  %v2154_v20 = vpack.c.bf16 %v93_v17, %v92_v16  ;;  %v94_v21 = vld [vmem:[%s3168_s4 + $0x50] sm:$0xff]  ;;  %v95_v22 = vld [vmem:[%s3168_s4 + $0x58] sm:$0xff]  ;;  %v96_v26 = vld [vmem:[%s3168_s4 + $0x60] sm:$0xff]  ;;  %s2451_s25 = smov 32   ;;  %s3187_s18 = sld [smem:[#allocation9_spill]] }
   0xd   :  { %v2158_v25 = vpack.c.bf16 %v95_v22, %v94_v21  ;;  %v97_v27 = vld [vmem:[%s3168_s4 + $0x68] sm:$0xff]  ;;  %v98_v31 = vld [vmem:[%s3168_s4 + $0x70] sm:$0xff]  ;;  %v99_v32 = vld [vmem:[%s3168_s4 + $0x78] sm:$0xff]  ;;  %s2455_s0 = smov [#allocation4]  }
   0xe   :  { %v61_v18 = vadd.f32 %v60_v14, %v59_v13  ;;  %v2162_v30 = vpack.c.bf16 %v97_v27, %v96_v26  ;;  %v2166_v37 = vpack.c.bf16 %v99_v32, %v98_v31  ;;  %v218_v50 = vld [vmem:[%s3170_s6 + $0x8] sm:$0xff]  ;;  %v225_v51 = vld [vmem:[%s3170_s6 + $0x40] sm:$0xff]  ;;  %v224_v54 = vld [vmem:[%s3170_s6 + $0x38] sm:$0xff]  ;;  %v2447_v32 = vmov 0.0   ;;  %s1845_s30 = sshll.u32 %s2455_s0, 4  ;;  %s1846_s30 = int_to_ptr.vmem [resolvable:$true] %s1845_s30 }
   0xf   :  { %2149 = vmatpush3.bf16.msra.mxu0 %v2146_v8  ;;  %v2170_v52 = vpack.c.bf16 %v225_v51, %v218_v50  ;;  %v217_v53 = vld [vmem:[%s3170_s6] sm:$0xff]  ;;  %v222_v55 = vld [vmem:[%s3170_s6 + $0x28] sm:$0xff]  ;;  %v228_v59 = vld [vmem:[%s3170_s6 + $0x58] sm:$0xff]  ;;  %408 = vmatprep.mubr.f32.mxu1 %v2447_v32  ;;  %p2404_p1 = scmp.lt.s32.totalorder %s1846_s30, %s1846_s30 }
  0x10   :  { %v62_v19 = vrot.slane %v61_v18, 2  ;;  %2151 = vmatprep.subr.bf16.mxu0 %v2150_v15  ;;  %v2172_v56 = vpack.c.bf16 %v224_v54, %v217_v53  ;;  %v229_v57 = vld [vmem:[%s3170_s6 + $0x60] sm:$0xff]  ;;  %v232_v62 = vld [vmem:[%s3170_s6 + $0x78] sm:$0xff]  ;;  %v239_v63 = vld [vmem:[%s3170_s6 + $0xb0] sm:$0xff] }
  0x11   :  { %v221_v58 = vld [vmem:[%s3170_s6 + $0x20] sm:$0xff]  ;;  %2171 = vmatprep.subr.bf16.mxu1 %v2170_v52  ;;  %v2218_v60 = vpack.c.bf16 %v229_v57, %v222_v55  ;;  %v2174_v0 = vpack.c.bf16 %v239_v63, %v232_v62  ;;  %v231_v1 = vld [vmem:[%s3170_s6 + $0x70] sm:$0xff]  ;;  %v238_v2 = vld [vmem:[%s3170_s6 + $0xa8] sm:$0xff] }
  0x12   :  { %v63_v23 = vadd.f32 %v62_v19, %v61_v18  ;;  %v2220_v61 = vpack.c.bf16 %v228_v59, %v221_v58  ;;  %2173 = vmatpush1.bf16.msra.mxu1 %v2172_v56  ;;  %v236_v3 = vld [vmem:[%s3170_s6 + $0x98] sm:$0xff]  ;;  %v2176_v4 = vpack.c.bf16 %v238_v2, %v231_v1  ;;  %v243_v5 = vld [vmem:[%s3170_s6 + $0xd0] sm:$0xff]  ;;  %v242_v7 = vld [vmem:[%s3170_s6 + $0xc8] sm:$0xff] }
  0x13   :  { %2153 = vmatpush3.bf16.msra.mxu0 %v2150_v15  ;;  %v235_v6 = vld [vmem:[%s3170_s6 + $0x90] sm:$0xff]  ;;  %2175 = vmatprep.subr.bf16.mxu1 %v2174_v0  ;;  %v2222_v8 = vpack.c.bf16 %v243_v5, %v236_v3  ;;  %v253_v11 = vld [vmem:[%s3170_s6 + $0x120] sm:$0xff]  ;;  %v252_v14 = vld [vmem:[%s3170_s6 + $0x118] sm:$0xff] }
  0x14   :  { %v64_v24 = vrot.slane %v63_v23, 1  ;;  %2155 = vmatprep.subr.bf16.mxu0 %v2154_v20  ;;  %v245_v13 = vld [vmem:[%s3170_s6 + $0xe0] sm:$0xff]  ;;  %v250_v15 = vld [vmem:[%s3170_s6 + $0x108] sm:$0xff]  ;;  %v256_v19 = vld [vmem:[%s3170_s6 + $0x138] sm:$0xff] }
  0x15   :  { %v2180_v16 = vpack.c.bf16 %v252_v14, %v245_v13  ;;  %v257_v17 = vld [vmem:[%s3170_s6 + $0x140] sm:$0xff]  ;;  %v260_v22 = vld [vmem:[%s3170_s6 + $0x158] sm:$0xff]  ;;  %v266_v26 = vld [vmem:[%s3170_s6 + $0x188] sm:$0xff] }
  0x16   :  { %v65_v28 = vadd.f32 %v64_v24, %v63_v23  ;;  %2177 = vmatpush1.bf16.msra.mxu1 %v2176_v4  ;;  %v249_v18 = vld [vmem:[%s3170_s6 + $0x100] sm:$0xff]  ;;  %v267_v23 = vld [vmem:[%s3170_s6 + $0x190] sm:$0xff]  ;;  %v264_v27 = vld [vmem:[%s3170_s6 + $0x178] sm:$0xff] }
  0x17   :  { %2157 = vmatpush3.bf16.msra.mxu0 %v2154_v20  ;;  %v2226_v20 = vpack.c.bf16 %v257_v17, %v250_v15  ;;  %v2228_v21 = vpack.c.bf16 %v256_v19, %v249_v18  ;;  %v2182_v24 = vpack.c.bf16 %v267_v23, %v260_v22  ;;  %v270_v31 = vld [vmem:[%s3170_s6 + $0x1a8] sm:$0xff]  ;;  %v292_v52 = vld [vmem:[%s3170_s6 + $0x258] sm:$0xff]  ;;  %v299_v53 = vld [vmem:[%s3170_s6 + $0x290] sm:$0xff] }
  0x18   :  { %v67_v29 = vmul.f32 0.0625, %v65_v28  ;;  %2159 = vmatprep.subr.bf16.mxu0 %v2158_v25  ;;  %v294_v50 = vld [vmem:[%s3170_s6 + $0x268] sm:$0xff]  ;;  %v291_v54 = vld [vmem:[%s3170_s6 + $0x250] sm:$0xff]  ;;  %v2238_v56 = vpack.c.bf16 %v299_v53, %v292_v52  ;;  %v220_v58 = vld [vmem:[%s3170_s6 + $0x18] sm:$0xff] }
  0x19   :  { %v298_v57 = vld [vmem:[%s3170_s6 + $0x288] sm:$0xff]  ;;  %v227_v59 = vld [vmem:[%s3170_s6 + $0x50] sm:$0xff]  ;;  %v1857_v62 = vld [vmem:[%s3169_s5] ss:$0 sm:$0xff] }
  0x1a   :  { %v68_v33 = vsub.f32 %v57_v9, %v67_v29  ;;  %v69_v34 = vsub.f32 %v58_v10, %v67_v29  ;;  %v2224_v9 = vpack.c.bf16 %v242_v7, %v235_v6  ;;  %v246_v10 = vld [vmem:[%s3170_s6 + $0xe8] sm:$0xff]  ;;  %v271_v29 = vld [vmem:[%s3170_s6 + $0x1b0] sm:$0xff] }
  0x1b   :  { %2161 = vmatpush3.bf16.msra.mxu0 %v2158_v25  ;;  %v2178_v12 = vpack.c.bf16 %v253_v11, %v246_v10  ;;  %v259_v25 = vld [vmem:[%s3170_s6 + $0x150] sm:$0xff] }
  0x1c   :  { %v70_v35 = vmul.f32 %v68_v33, %v68_v33  ;;  %v71_v36 = vmul.f32 %v69_v34, %v69_v34  ;;  %2163 = vmatprep.subr.bf16.mxu0 %v2162_v30  ;;  %v2184_v28 = vpack.c.bf16 %v266_v26, %v259_v25 }
  0x1d   :  { %2179 = vmatprep.subr.bf16.mxu1 %v2178_v12 }
  0x1e   :  { %v72_v38 = vadd.f32 %v71_v36, %v70_v35  ;;  %2181 = vmatpush1.bf16.msra.mxu1 %v2180_v16  ;;  %v274_v35 = vld [vmem:[%s3170_s6 + $0x1c8] sm:$0xff]  ;;  %v281_v36 = vld [vmem:[%s3170_s6 + $0x200] sm:$0xff] }
  0x1f   :  { %2165 = vmatpush3.bf16.msra.mxu0 %v2162_v30  ;;  %v263_v30 = vld [vmem:[%s3170_s6 + $0x170] sm:$0xff]  ;;  %2183 = vmatprep.subr.bf16.mxu1 %v2182_v24 }
  0x20   :  { %v73_v39 = vrot.slane %v72_v38, 4  ;;  %2167 = vmatprep.subr.bf16.mxu0 %v2166_v37 }
  0x22   :  { %v74_v40 = vadd.f32 %v73_v39, %v72_v38  ;;  %2185 = vmatpush1.bf16.msra.mxu1 %v2184_v28  ;;  %v2186_v38 = vpack.c.bf16 %v281_v36, %v274_v35  ;;  %v280_v39 = vld [vmem:[%s3170_s6 + $0x1f8] sm:$0xff]  ;;  %v234_v35 = vld [vmem:[%s3170_s6 + $0x88] sm:$0xff]  ;;  %v241_v36 = vld [vmem:[%s3170_s6 + $0xc0] sm:$0xff] }
  0x23   :  { %2169 = vmatpush3.bf16.msra.mxu0 %v2166_v37  ;;  %v273_v37 = vld [vmem:[%s3170_s6 + $0x1c0] sm:$0xff] }
  0x24   :  { %v75_v41 = vrot.slane %v74_v40, 2  ;;  %2219 = vmatprep.subr.bf16.mxu0 %v2218_v60  ;;  %2187 = vmatprep.subr.bf16.mxu1 %v2186_v38  ;;  %v2194_v60 = vpack.c.bf16 %v227_v59, %v220_v58 }
  0x26   :  { %v76_v42 = vadd.f32 %v75_v41, %v74_v40  ;;  %v278_v40 = vld [vmem:[%s3170_s6 + $0x1e8] sm:$0xff]  ;;  %v285_v41 = vld [vmem:[%s3170_s6 + $0x220] sm:$0xff] }
  0x28   :  { %v77_v43 = vrot.slane %v76_v42, 1 }
  0x2a   :  { %v78_v44 = vadd.f32 %v77_v43, %v76_v42  ;;  %v2188_v42 = vpack.c.bf16 %v280_v39, %v273_v37  ;;  %v2234_v43 = vpack.c.bf16 %v285_v41, %v278_v40  ;;  %v2198_v40 = vpack.c.bf16 %v241_v36, %v234_v35 }
  0x2c   :  { %v79_v45 = vmul.f32 0.0625, %v78_v44  ;;  %v277_v44 = vld [vmem:[%s3170_s6 + $0x1e0] sm:$0xff]  ;;  %2189 = vmatpush1.bf16.msra.mxu1 %v2188_v42 }
  0x2d   :  { %v233_v42 = vld [vmem:[%s3170_s6 + $0x80] sm:$0xff] }
  0x2e   :  { %v80_v46 = vadd.f32 1e-05, %v79_v45  ;;  %v284_v45 = vld [vmem:[%s3170_s6 + $0x218] sm:$0xff] }
  0x30   :  { %2353 = vrsqrt.f32 %v80_v46  ;;  %v288_v46 = vld [vmem:[%s3170_s6 + $0x238] sm:$0xff] }
  0x3a   :  { %v2354_v47 = vpop.eup %2353 }
  0x3b   :  { %v82_v48 = vmul.f32 %v2354_v47, %v68_v33  ;;  %v83_v49 = vmul.f32 %v2354_v47, %v69_v34  ;;  %v2230_v33 = vpack.c.bf16 %v271_v29, %v264_v27  ;;  %v2232_v34 = vpack.c.bf16 %v270_v31, %v263_v30 }
  0x3c   :  { %v2236_v47 = vpack.c.bf16 %v284_v45, %v277_v44  ;;  %v248_v44 = vld [vmem:[%s3170_s6 + $0xf8] sm:$0xff]  ;;  %v255_v45 = vld [vmem:[%s3170_s6 + $0x130] sm:$0xff] }
  0x3d   :  { %2002 = vmatprep.mubr.f32.mxu0 %v82_v48  ;;  %v295_v48 = vld [vmem:[%s3170_s6 + $0x270] sm:$0xff] }
  0x3e   :  { %2003 = vmatmul.mubr.f32.vlgmr.msra.gmra.mrb[0].mxu0 %v83_v49  ;;  %v287_v49 = vld [vmem:[%s3170_s6 + $0x230] sm:$0xff]  ;;  %v2190_v51 = vpack.c.bf16 %v295_v48, %v288_v46 }
  0x3f   :  { %2221 = vmatpush1.bf16.msra.mxu0 %v2220_v61  ;;  %562 = vmatprep.mubr.f32.mxu0 %v2447_v32  ;;  %v2192_v55 = vpack.c.bf16 %v294_v50, %v287_v49  ;;  %v2240_v61 = vpack.c.bf16 %v298_v57, %v291_v54  ;;  %v247_v48 = vld [vmem:[%s3170_s6 + $0xf0] sm:$0xff]  ;;  %v254_v49 = vld [vmem:[%s3170_s6 + $0x128] sm:$0xff]  ;;  %v261_v54 = vld [vmem:[%s3170_s6 + $0x160] sm:$0xff] }
  0x40   :  { %2223 = vmatprep.subr.bf16.mxu0 %v2222_v8  ;;  %2191 = vmatprep.subr.bf16.mxu1 %v2190_v51  ;;  %v262_v50 = vld [vmem:[%s3170_s6 + $0x168] sm:$0xff]  ;;  %v269_v51 = vld [vmem:[%s3170_s6 + $0x1a0] sm:$0xff]  ;;  %v2204_v52 = vpack.c.bf16 %v254_v49, %v247_v48  ;;  %v283_v57 = vld [vmem:[%s3170_s6 + $0x210] sm:$0xff] }
  0x41   :  { %2193 = vmatpush1.bf16.msra.mxu1 %v2192_v55  ;;  %v2206_v53 = vpack.c.bf16 %v269_v51, %v262_v50  ;;  %v268_v55 = vld [vmem:[%s3170_s6 + $0x198] sm:$0xff] }
  0x42   :  { %2195 = vmatprep.subr.bf16.mxu1 %v2194_v60  ;;  %v2208_v58 = vpack.c.bf16 %v268_v55, %v261_v54  ;;  %v275_v60 = vld [vmem:[%s3170_s6 + $0x1d0] sm:$0xff] }
  0x43   :  { %2225 = vmatpush1.bf16.msra.mxu0 %v2224_v9 }
  0x44   :  { %2227 = vmatprep.subr.bf16.mxu0 %v2226_v20 }
  0x47   :  { %2229 = vmatpush1.bf16.msra.mxu0 %v2228_v21 }
  0x48   :  { %2231 = vmatprep.subr.bf16.mxu0 %v2230_v33  ;;  %v219_v33 = vld [vmem:[%s3170_s6 + $0x10] sm:$0xff] }
  0x4b   :  { %2233 = vmatpush1.bf16.msra.mxu0 %v2232_v34  ;;  %v226_v34 = vld [vmem:[%s3170_s6 + $0x48] sm:$0xff] }
  0x4c   :  { %2235 = vmatprep.subr.bf16.mxu0 %v2234_v43  ;;  %v2196_v38 = vpack.c.bf16 %v226_v34, %v219_v33  ;;  %v240_v43 = vld [vmem:[%s3170_s6 + $0xb8] sm:$0xff] }
  0x4d   :  { %v2200_v46 = vpack.c.bf16 %v240_v43, %v233_v42 }
  0x4f   :  { %2237 = vmatpush1.bf16.msra.mxu0 %v2236_v47  ;;  %v2202_v47 = vpack.c.bf16 %v255_v45, %v248_v44 }
  0x50   :  { %2239 = vmatprep.subr.bf16.mxu0 %v2238_v56  ;;  %v276_v56 = vld [vmem:[%s3170_s6 + $0x1d8] sm:$0xff] }
  0x51   :  { %v2210_v59 = vpack.c.bf16 %v283_v57, %v276_v56 }
  0x53   :  { %2241 = vmatpush1.bf16.msra.mxu0 %v2240_v61  ;;  %v282_v61 = vld [vmem:[%s3170_s6 + $0x208] sm:$0xff] }
 0x111   :  { %v2004_v63 = vpop.f32.mrb[0].mxu0 }
 0x112   :  { %v179_v0 = vadd.f32 %v2004_v63, %v1857_v62  ;;  %v173_v1 = vpop.f32.mrb[1].mxu0  ;;  %v297_v63 = vld [vmem:[%s3170_s6 + $0x280] sm:$0xff] }
 0x113   :  { %v174_v2 = vadd.f32 %v1857_v62, %v173_v1  ;;  %v290_v62 = vld [vmem:[%s3170_s6 + $0x248] sm:$0xff] }
 0x114   :  { %vm183_vm0 = vcmp.gt.f32.partialorder %v179_v0, 0.0  ;;  %v185_v3 = vmul.f32 0.1, %v179_v0  ;;  %v2214_v1 = vpack.c.bf16 %v297_v63, %v290_v62 }
 0x115   :  { %vm182_vm2 = vcmp.gt.f32.partialorder %v174_v2, 0.0  ;;  %v184_v4 = vmul.f32 0.1, %v174_v2 }
 0x116   :  { %v187_v5 = vsel %vm183_vm0, %v179_v0, %v185_v3  ;;  %v2212_v0 = vpack.c.bf16 %v282_v61, %v275_v60  ;;  %v296_v3 = vld [vmem:[%s3170_s6 + $0x278] sm:$0xff] }
 0x117   :  { %v190_v6 = vsel %vm188_vm1, %v187_v5, 0.0  ;;  %v186_v7 = vsel %vm182_vm2, %v174_v2, %v184_v4  ;;  %v289_v2 = vld [vmem:[%s3170_s6 + $0x240] sm:$0xff]  ;;  %v223_v4 = vld [vmem:[%s3170_s6 + $0x30] sm:$0xff] }
 0x118   :  { %v189_v8 = vsel %vm188_vm1, %v186_v7, 0.0 }
 0x119   :  { %v191_v9 = vadd.f32 %v190_v6, %v189_v8  ;;  %v2216_v6 = vpack.c.bf16 %v296_v3, %v289_v2  ;;  %v237_v8 = vld [vmem:[%s3170_s6 + $0xa0] sm:$0xff] }
 0x11b   :  { %v192_v10 = vrot.slane %v191_v9, 4 }
 0x11d   :  { %v193_v11 = vadd.f32 %v192_v10, %v191_v9  ;;  %v244_v9 = vld [vmem:[%s3170_s6 + $0xd8] sm:$0xff] }
 0x11e   :  { %v2246_v10 = vpack.c.bf16 %v244_v9, %v237_v8 }
 0x11f   :  { %v194_v12 = vrot.slane %v193_v11, 2 }
 0x121   :  { %v195_v13 = vadd.f32 %v194_v12, %v193_v11  ;;  %v251_v11 = vld [vmem:[%s3170_s6 + $0x110] sm:$0xff]  ;;  %v258_v12 = vld [vmem:[%s3170_s6 + $0x148] sm:$0xff] }
 0x123   :  { %v196_v14 = vrot.slane %v195_v13, 1 }
 0x125   :  { %v197_v15 = vadd.f32 %v196_v14, %v195_v13  ;;  %v2250_v13 = vpack.c.bf16 %v258_v12, %v251_v11  ;;  %v265_v14 = vld [vmem:[%s3170_s6 + $0x180] sm:$0xff] }
 0x127   :  { %v198_v16 = vmul.f32 0.0625, %v197_v15  ;;  %v272_v15 = vld [vmem:[%s3170_s6 + $0x1b8] sm:$0xff] }
 0x129   :  { %v199_v17 = vsub.f32 %v186_v7, %v198_v16  ;;  %v200_v18 = vsub.f32 %v187_v5, %v198_v16  ;;  %v230_v5 = vld [vmem:[%s3170_s6 + $0x68] sm:$0xff]  ;;  %v2254_v16 = vpack.c.bf16 %v272_v15, %v265_v14 }
 0x12a   :  { %v2242_v7 = vpack.c.bf16 %v230_v5, %v223_v4 }
 0x12b   :  { %v201_v19 = vmul.f32 %v199_v17, %v199_v17  ;;  %v202_v20 = vmul.f32 %v200_v18, %v200_v18 }
 0x12d   :  { %v203_v21 = vsel %vm188_vm1, %v201_v19, 0.0  ;;  %v204_v22 = vsel %vm188_vm1, %v202_v20, 0.0  ;;  %v293_v20 = vld [vmem:[%s3170_s6 + $0x260] sm:$0xff] }
 0x12e   :  { %v205_v23 = vadd.f32 %v204_v22, %v203_v21  ;;  %v300_v21 = vld [vmem:[%s3170_s6 + $0x298] sm:$0xff] }
 0x12f   :  { %v2262_v22 = vpack.c.bf16 %v300_v21, %v293_v20 }
 0x130   :  { %v206_v24 = vrot.slane %v205_v23, 4 }
 0x132   :  { %v207_v25 = vadd.f32 %v206_v24, %v205_v23  ;;  %v303_v23 = vlaneseq }
 0x134   :  { %v208_v26 = vrot.slane %v207_v25, 2  ;;  %v2886_v24 = vshrl.u32 %v303_v23, 7 }
 0x136   :  { %v209_v27 = vadd.f32 %v208_v26, %v207_v25  ;;  %v305_v25 = vsub.s32 0, %v2886_v24  ;;  %v321_v26 = vsub.s32 4, %v2886_v24  ;;  %v313_v60 = vsub.s32 2, %v2886_v24 }
 0x137   :  { %v317_v61 = vsub.s32 3, %v2886_v24 }
 0x138   :  { %v210_v28 = vrot.slane %v209_v27, 1 }
 0x13a   :  { %v211_v29 = vadd.f32 %v210_v28, %v209_v27  ;;  %v2893_v27 = vld [vmem:[%s3171_s7] sm:$0x7f]  ;;  %v309_v28 = vsub.s32 1, %v2886_v24  ;;  %s2449_s7 = smov 96  }
 0x13b   :  { %v314_v63 = vrot.slane %v2893_v27, %v313_v60 }
 0x13c   :  { %v212_v30 = vmul.f32 0.0625, %v211_v29  ;;  %v306_v29 = vrot.slane %v2893_v27, %v305_v25 }
 0x13e   :  { %v213_v31 = vadd.f32 1e-05, %v212_v30  ;;  %v322_v30 = vrot.slane %v2893_v27, %v321_v26 }
 0x140   :  { %2355 = vrsqrt.f32 %v213_v31  ;;  %v310_v31 = vrot.slane %v2893_v27, %v309_v28 }
 0x14a   :  { %v2356_v37 = vpop.eup %2355 }
 0x14b   :  { %v2772_v39 = vmul.f32 %v2356_v37, %v199_v17  ;;  %v2774_v41 = vmul.f32 %v2356_v37, %v200_v18  ;;  %v279_v17 = vld [vmem:[%s3170_s6 + $0x1f0] sm:$0xff]  ;;  %v286_v18 = vld [vmem:[%s3170_s6 + $0x228] sm:$0xff]  ;;  %s2448_s6 = smov 64  }
 0x14c   :  { %v2258_v19 = vpack.c.bf16 %v286_v18, %v279_v17  ;;  %v329_v18 = vsub.s32 6, %v2886_v24 }
 0x14d   :  { %1858 = vmatmul.mubr.msk.f32.vlgmr.msra.gmra.mrb[0].mxu1 %vm188_vm1, %v2772_v39  ;;  %1862 = vmatmul.mubr.msk.f32.vlgmr.msra.gmra.mrb[2].mxu0 %vm188_vm1, %v2772_v39 }
 0x14e   :  { %2197 = vmatpush1.bf16.msra.mxu1 %v2196_v38  ;;  %414 = vmatprep.mubr.f32.mxu1 %v2447_v32 }
 0x14f   :  { %2199 = vmatprep.subr.bf16.mxu1 %v2198_v40  ;;  %568 = vmatprep.mubr.f32.mxu0 %v2447_v32 }
 0x151   :  { %1859 = vmatmul.mubr.msk.f32.gmra.mrb[2].mxu1 %vm188_vm1, %v2774_v41  ;;  %1863 = vmatmul.mubr.msk.f32.gmra.mrb[4].mxu0 %vm188_vm1, %v2774_v41 }
 0x152   :  { %2201 = vmatpush1.bf16.msra.mxu1 %v2200_v46  ;;  %485 = vmatprep.mubr.f32.mxu1 %v2447_v32 }
 0x153   :  { %2203 = vmatprep.subr.bf16.mxu1 %v2202_v47 }
 0x156   :  { %2205 = vmatpush1.bf16.msra.mxu1 %v2204_v52 }
 0x157   :  { %2207 = vmatprep.subr.bf16.mxu1 %v2206_v53 }
 0x15a   :  { %2209 = vmatpush1.bf16.msra.mxu1 %v2208_v58 }
 0x15b   :  { %2211 = vmatprep.subr.bf16.mxu1 %v2210_v59 }
 0x15e   :  { %2213 = vmatpush1.bf16.msra.mxu1 %v2212_v0  ;;  %v318_v0 = vrot.slane %v2893_v27, %v317_v61 }
 0x15f   :  { %2215 = vmatprep.subr.bf16.mxu1 %v2214_v1 }
 0x162   :  { %2217 = vmatpush1.bf16.msra.mxu1 %v2216_v6 }
 0x163   :  { %2243 = vmatprep.subr.bf16.mxu1 %v2242_v7 }
 0x165   :  { %1860 = vmatmul.mubr.msk.f32.vlgmr.msra.gmra.mrb[4].mxu1 %vm188_vm1, %v2772_v39 }
 0x166   :  { %2245 = vmatpush3.bf16.msra.mxu1 %v2242_v7  ;;  %491 = vmatprep.mubr.f32.mxu1 %v2447_v32 }
 0x167   :  { %2247 = vmatprep.subr.bf16.mxu1 %v2246_v10 }
 0x169   :  { %1861 = vmatmul.mubr.msk.f32.gmra.mrb[6].mxu1 %vm188_vm1, %v2774_v41 }
 0x16a   :  { %2249 = vmatpush3.bf16.msra.mxu1 %v2246_v10  ;;  %2029 = vmatprep.mubr.msk.f32.mxu1 %vm188_vm1, %v2772_v39 }
 0x16b   :  { %2251 = vmatprep.subr.bf16.mxu1 %v2250_v13 }
 0x16e   :  { %2253 = vmatpush3.bf16.msra.mxu1 %v2250_v13 }
 0x16f   :  { %2255 = vmatprep.subr.bf16.mxu1 %v2254_v16 }
 0x172   :  { %2257 = vmatpush3.bf16.msra.mxu1 %v2254_v16 }
 0x173   :  { %2259 = vmatprep.subr.bf16.mxu1 %v2258_v19 }
 0x176   :  { %2261 = vmatpush3.bf16.msra.mxu1 %v2258_v19  ;;  %v330_v19 = vrot.slane %v2893_v27, %v329_v18 }
 0x177   :  { %2263 = vmatprep.subr.bf16.mxu1 %v2262_v22 }
 0x17a   :  { %2265 = vmatpush3.bf16.msra.mxu1 %v2262_v22 }
 0x17d   :  { %2030 = vmatmul.mubr.msk.f32.vlgmr.msra.gmra.mrb[8].mxu1 %vm188_vm1, %v2774_v41 }
 0x220   :  { %v410_v33 = vpop.f32.mrb[0].mxu1  ;;  %v564_v34 = vpop.f32.mrb[2].mxu0 }
 0x221   :  { %v411_v35 = vadd.f32 %v410_v33, %v306_v29  ;;  %v565_v36 = vadd.f32 %v564_v34, %v322_v30  ;;  %v412_v37 = vpop.f32.mrb[1].mxu1  ;;  %v2899_v38 = vpop.f32.mrb[3].mxu0 }
 0x222   :  { %v413_v39 = vadd.f32 %v412_v37, %v310_v31 }
 0x223   :  { %v668_v40 = vmul.f32 0.1, %v565_v36  ;;  %vm654_vm3 = vcmp.gt.f32.partialorder %v565_v36, 0.0  ;;  %v664_v42 = vmul.f32 0.1, %v411_v35  ;;  %vm650_vm4 = vcmp.gt.f32.partialorder %v411_v35, 0.0 }
 0x224   :  { %v416_v41 = vpop.f32.mrb[2].mxu1  ;;  %v570_v44 = vpop.f32.mrb[4].mxu0  ;;  %v665_v47 = vmul.f32 0.1, %v413_v39  ;;  %vm651_vm5 = vcmp.gt.f32.partialorder %v413_v39, 0.0 }
 0x225   :  { %v417_v43 = vadd.f32 %v416_v41, %v306_v29  ;;  %v418_v45 = vpop.f32.mrb[3].mxu1  ;;  %v682_v46 = vsel %vm654_vm3, %v565_v36, %v668_v40  ;;  %v2901_v49 = vpop.f32.mrb[5].mxu0  ;;  %v678_v52 = vsel %vm650_vm4, %v411_v35, %v664_v42  ;;  %v571_v58 = vadd.f32 %v570_v44, %v322_v30 }
 0x226   :  { %v419_v48 = vadd.f32 %v418_v45, %v310_v31  ;;  %2050 = vmatprep.mubr.f32.mxu1 %v682_v46  ;;  %v679_v55 = vsel %vm651_vm5, %v413_v39, %v665_v47  ;;  %vm879_vm5 = vcmask 261120  }
 0x227   :  { %vm657_vm6 = vcmp.gt.f32.partialorder %v417_v43, 0.0  ;;  %v671_v50 = vmul.f32 0.1, %v417_v43  ;;  %v675_v59 = vmul.f32 0.1, %v571_v58  ;;  %vm661_vm8 = vcmp.gt.f32.partialorder %v571_v58, 0.0 }
 0x228   :  { %vm658_vm7 = vcmp.gt.f32.partialorder %v419_v48, 0.0  ;;  %v672_v51 = vmul.f32 0.1, %v419_v48 }
 0x229   :  { %v685_v53 = vsel %vm657_vm6, %v417_v43, %v671_v50  ;;  %v689_v62 = vsel %vm661_vm8, %v571_v58, %v675_v59 }
 0x22a   :  { %v2266_v54 = vpack.c.bf16 %v685_v53, %v678_v52  ;;  %v686_v56 = vsel %vm658_vm7, %v419_v48, %v672_v51 }
 0x22b   :  { %v2274_v57 = vpack.c.bf16 %v686_v56, %v679_v55 }
 0x22c   :  { %2267 = vmatprep.subr.bf16.mxu0 %v2266_v54 }
 0x22d   :  { %2269 = vmatpush3.bf16.xpose.msra.mxu0 %v2266_v54  ;;  %2275 = vmatprep.subr.bf16.mxu1 %v2274_v57  ;;  %v325_v54 = vsub.s32 5, %v2886_v24 }
 0x22e   :  { %2277 = vmatpush3.bf16.xpose.msra.mxu1 %v2274_v57 }
 0x22f   :  { %v326_v56 = vrot.slane %v2893_v27, %v325_v54 }
 0x231   :  { %v567_v57 = vadd.f32 %v2899_v38, %v326_v56 }
 0x233   :  { %v669_v60 = vmul.f32 0.1, %v567_v57  ;;  %vm655_vm0 = vcmp.gt.f32.partialorder %v567_v57, 0.0 }
 0x235   :  { %2051 = vmatmul.mubr.f32.vlgmr.msra.gmra.mrb[10].mxu1 %v689_v62 }
 0x238   :  { %v487_v1 = vpop.f32.mrb[4].mxu1 }
 0x239   :  { %v488_v2 = vadd.f32 %v487_v1, %v314_v63  ;;  %v489_v3 = vpop.f32.mrb[5].mxu1 }
 0x23a   :  { %v490_v4 = vadd.f32 %v489_v3, %v318_v0 }
 0x23b   :  { %v666_v7 = vmul.f32 0.1, %v488_v2  ;;  %vm652_vm10 = vcmp.gt.f32.partialorder %v488_v2, 0.0 }
 0x23c   :  { %v667_v5 = vmul.f32 0.1, %v490_v4  ;;  %v493_v6 = vpop.f32.mrb[6].mxu1  ;;  %vm653_vm9 = vcmp.gt.f32.partialorder %v490_v4, 0.0 }
 0x23d   :  { %v494_v8 = vadd.f32 %v493_v6, %v314_v63  ;;  %v495_v9 = vpop.f32.mrb[7].mxu1  ;;  %v680_v14 = vsel %vm652_vm10, %v488_v2, %v666_v7  ;;  %v573_v63 = vadd.f32 %v2901_v49, %v326_v56  ;;  %vm2453_vm10 = vmmov 0  }
 0x23e   :  { %v496_v10 = vadd.f32 %v495_v9, %v318_v0  ;;  %v681_v11 = vsel %vm653_vm9, %v490_v4, %v667_v5  ;;  %v683_v0 = vsel %vm655_vm0, %v567_v57, %v669_v60 }
 0x23f   :  { %vm659_vm11 = vcmp.gt.f32.partialorder %v494_v8, 0.0  ;;  %v673_v12 = vmul.f32 0.1, %v494_v8  ;;  %2036 = vmatprep.mubr.f32.mxu0 %v681_v11  ;;  %v676_v24 = vmul.f32 0.1, %v573_v63  ;;  %vm662_vm2 = vcmp.gt.f32.partialorder %v573_v63, 0.0 }
 0x240   :  { %vm660_vm12 = vcmp.gt.f32.partialorder %v496_v10, 0.0  ;;  %v674_v13 = vmul.f32 0.1, %v496_v10 }
 0x241   :  { %v687_v15 = vsel %vm659_vm11, %v494_v8, %v673_v12  ;;  %v690_v27 = vsel %vm662_vm2, %v573_v63, %v676_v24 }
 0x242   :  { %v688_v16 = vsel %vm660_vm12, %v496_v10, %v674_v13  ;;  %v2907_v17 = vpack.c.bf16 %v687_v15, %v680_v14 }
 0x243   :  { %2037 = vmatmul.mubr.f32.vlgmr.msra.gmra.mrb[6].mxu0 %v688_v16 }
 0x250   :  { %v2031_v20 = vpop.f32.mrb[8].mxu1 }
 0x251   :  { %v647_v21 = vadd.f32 %v2031_v20, %v330_v19  ;;  %v641_v22 = vpop.f32.mrb[9].mxu1 }
 0x252   :  { %v642_v23 = vadd.f32 %v641_v22, %v330_v19 }
 0x253   :  { %vm663_vm13 = vcmp.gt.f32.partialorder %v647_v21, 0.0  ;;  %v677_v25 = vmul.f32 0.1, %v647_v21 }
 0x254   :  { %vm656_vm14 = vcmp.gt.f32.partialorder %v642_v23, 0.0  ;;  %v670_v26 = vmul.f32 0.1, %v642_v23 }
 0x255   :  { %v691_v28 = vsel %vm663_vm13, %v647_v21, %v677_v25  ;;  %vm1431_vm13 = vcmask 523264  }
 0x256   :  { %v684_v29 = vsel %vm656_vm14, %v642_v23, %v670_v26 }
 0x257   :  { %v2270_v30 = vpack.c.bf16 %v691_v28, %v684_v29  ;;  %v2911_v31 = vpack.i.bf16 %v691_v28, %v684_v29 }
 0x259   :  { %2271 = vmatprep.subr.bf16.mxu0 %v2270_v30 }
 0x25a   :  { %2273 = vmatpush3.bf16.msra.mxu0 %v2270_v30 }
 0x25b   :  { %2283 = vmatprep.subr.bf16.mxu0 %v2907_v17 }
 0x308   :  { %v2052_v33 = vpop.f32.mrb[10].mxu1 }
 0x309   :  { %v989_v34 = vpop.f32.mrb[11].mxu1  ;;  %v1001_v52 = vsel %vm769_vm15, %v2052_v33, -inf }
 0x30a   :  { %v998_v40 = vsel %vm769_vm15, %v989_v34, -inf }
 0x316   :  { %v2038_v35 = vpop.f32.mrb[6].mxu0 }
 0x317   :  { %v760_v36 = vpop.f32.mrb[7].mxu0  ;;  %v773_v39 = vsel %vm769_vm15, %v2038_v35, -inf }
 0x318   :  { %v770_v37 = vsel %vm769_vm15, %v760_v36, -inf }
 0x319   :  { %771 = vmax.xlane.f32.xlu0 %v770_v37 }
 0x31d   :  { %774 = vmax.xlane.f32.xlu0 %v773_v39 }
 0x321   :  { %999 = vmax.xlane.f32.xlu0 %v998_v40 }
 0x3a6   :  { %v772_v41 = vpop.xlane.xlu0 %771 }
 0x3a7   :  { %v776_v42 = vsub.f32 %v760_v36, %v772_v41 }
 0x3a9   :  { %v778_v43 = vmul.f32 1.442695, %v776_v42 }
 0x3aa   :  { %v775_v44 = vpop.xlane.xlu0 %774 }
 0x3ab   :  { %2357 = vpow2.f32 %v778_v43  ;;  %v777_v45 = vsub.f32 %v2038_v35, %v775_v44 }
 0x3ad   :  { %v780_v46 = vmul.f32 1.442695, %v777_v45 }
 0x3ae   :  { %v1000_v1 = vpop.xlane.xlu0 %999 }
 0x3af   :  { %2359 = vpow2.f32 %v780_v46  ;;  %v1004_v3 = vsub.f32 %v989_v34, %v1000_v1 }
 0x3b1   :  { %v1006_v5 = vmul.f32 1.442695, %v1004_v3 }
 0x3b5   :  { %v2358_v47 = vpop.eup %2357 }
 0x3b6   :  { %v782_v48 = vsel %vm769_vm15, %v2358_v47, 0.0 }
 0x3b7   :  { %783 = vadd.xlane.f32.xlu1 %v782_v48 }
 0x3b9   :  { %v2360_v50 = vpop.eup %2359 }
 0x3ba   :  { %v785_v51 = vsel %vm769_vm15, %v2360_v50, 0.0 }
 0x3bb   :  { %786 = vadd.xlane.f32.xlu1 %v785_v51 }
 0x3bf   :  { %1002 = vmax.xlane.f32.xlu1 %v1001_v52 }
 0x444   :  { %v784_v53 = vpop.xlane.xlu1 %783 }
 0x445   :  { %2361 = vrcp.f32 %v784_v53 }
 0x448   :  { %v787_v55 = vpop.xlane.xlu1 %786 }
 0x449   :  { %2363 = vrcp.f32 %v787_v55 }
 0x44c   :  { %v1003_v38 = vpop.xlane.xlu1 %1002 }
 0x44d   :  { %v1005_v2 = vsub.f32 %v2052_v33, %v1003_v38 }
 0x44f   :  { %v2362_v58 = vpop.eup %2361  ;;  %v1008_v4 = vmul.f32 1.442695, %v1005_v2 }
 0x450   :  { %v789_v59 = vmul.f32 %v2362_v58, %v2358_v47 }
 0x451   :  { %2365 = vpow2.f32 %v1008_v4 }
 0x452   :  { %2043 = vmatprep.mubr.msk.f32.mxu0 %vm769_vm15, %v789_v59  ;;  %2367 = vpow2.f32 %v1006_v5 }
 0x453   :  { %v2364_v61 = vpop.eup %2363 }
 0x454   :  { %v791_v62 = vmul.f32 %v2364_v61, %v2360_v50 }
 0x456   :  { %2044 = vmatmul.mubr.msk.f32.vlgmr.msra.gmra.mrb[8].mxu0 %vm769_vm15, %v791_v62 }
 0x457   :  { %2285 = vmatpush3.bf16.xpose.msra.mxu0 %v2907_v17  ;;  %2064 = vmatprep.mubr.f32.mxu0 %v683_v0 }
 0x45b   :  { %v2366_v10 = vpop.eup %2365 }
 0x45c   :  { %v2368_v12 = vpop.eup %2367  ;;  %v1013_v13 = vsel %vm769_vm15, %v2366_v10, 0.0 }
 0x45d   :  { %v1010_v14 = vsel %vm769_vm15, %v2368_v12, 0.0 }
 0x45e   :  { %2065 = vmatmul.mubr.f32.vlgmr.msra.gmra.mrb[10].mxu0 %v690_v27 }
 0x45f   :  { %2113 = vmatprep.mubr.msk.f32.mxu0 %vm2453_vm10, %v2447_v32 }
 0x529   :  { %v2927_v6 = vpop.f32.mrb[8].mxu0 }
 0x52a   :  { %v2929_v49 = vpop.f32.mrb[9].mxu0  ;;  %v876_v55 = vmul.f32 0.1, %v2927_v6  ;;  %vm874_vm8 = vcmp.gt.f32.partialorder %v2927_v6, 0.0 }
 0x52b   :  { %v875_v62 = vmul.f32 0.1, %v2929_v49  ;;  %vm873_vm9 = vcmp.gt.f32.partialorder %v2929_v49, 0.0 }
 0x52c   :  { %v878_v2 = vsel %vm874_vm8, %v2927_v6, %v876_v55 }
 0x52d   :  { %v877_v1 = vsel %vm873_vm9, %v2929_v49, %v875_v62  ;;  %v883_v4 = vsel %vm879_vm5, %v878_v2, 0.0 }
 0x52e   :  { %v880_v3 = vsel %vm879_vm5, %v877_v1, 0.0 }
 0x531   :  { %v2066_v7 = vpop.f32.mrb[10].mxu0 }
 0x532   :  { %v1231_v8 = vpop.f32.mrb[11].mxu0  ;;  %v1243_v9 = vsel %vm769_vm15, %v2066_v7, -inf }
 0x533   :  { %1244 = vmax.xlane.f32.xlu1 %v1243_v9  ;;  %v1240_v11 = vsel %vm769_vm15, %v1231_v8, -inf }
 0x534   :  { %1241 = vmax.xlane.f32.xlu0 %v1240_v11 }
 0x537   :  { %1014 = vadd.xlane.f32.xlu1 %v1013_v13 }
 0x538   :  { %1011 = vadd.xlane.f32.xlu0 %v1010_v14 }
 0x5c0   :  { %v1245_v15 = vpop.xlane.xlu1 %1244 }
 0x5c1   :  { %v1247_v16 = vsub.f32 %v2066_v7, %v1245_v15  ;;  %v1242_v17 = vpop.xlane.xlu0 %1241 }
 0x5c2   :  { %v1246_v18 = vsub.f32 %v1231_v8, %v1242_v17 }
 0x5c3   :  { %v1250_v19 = vmul.f32 1.442695, %v1247_v16 }
 0x5c4   :  { %v1248_v20 = vmul.f32 1.442695, %v1246_v18  ;;  %v1015_v30 = vpop.xlane.xlu1 %1014 }
 0x5c5   :  { %2369 = vpow2.f32 %v1250_v19  ;;  %v1012_v21 = vpop.xlane.xlu0 %1011 }
 0x5c6   :  { %2371 = vpow2.f32 %v1248_v20 }
 0x5c7   :  { %2373 = vrcp.f32 %v1012_v21 }
 0x5c8   :  { %2375 = vrcp.f32 %v1015_v30 }
 0x5cf   :  { %v2370_v22 = vpop.eup %2369 }
 0x5d0   :  { %v2372_v23 = vpop.eup %2371  ;;  %v1255_v25 = vsel %vm769_vm15, %v2370_v22, 0.0 }
 0x5d1   :  { %1256 = vadd.xlane.f32.xlu1 %v1255_v25  ;;  %v1252_v26 = vsel %vm769_vm15, %v2372_v23, 0.0  ;;  %v2374_v28 = vpop.eup %2373 }
 0x5d2   :  { %1253 = vadd.xlane.f32.xlu0 %v1252_v26  ;;  %v1017_v29 = vmul.f32 %v2374_v28, %v2368_v12  ;;  %v2376_v43 = vpop.eup %2375 }
 0x5d3   :  { %v1019_v46 = vmul.f32 %v2376_v43, %v2366_v10 }
 0x5d4   :  { %2057 = vmatprep.mubr.msk.f32.mxu1 %vm769_vm15, %v1017_v29 }
 0x5e2   :  { %2345 = vrot.lane.b32.xlu1 %v2911_v31, %s2448_s6 }
 0x5e8   :  { %2340 = vrot.lane.b32.xlu0 %v2911_v31, %s2449_s7 }
 0x65e   :  { %v1257_v33 = vpop.xlane.xlu1 %1256 }
 0x65f   :  { %v1254_v34 = vpop.xlane.xlu0 %1253 }
 0x660   :  { %2377 = vrcp.f32 %v1254_v34 }
 0x661   :  { %2379 = vrcp.f32 %v1257_v33 }
 0x662   :  { %v2346_v35 = vpop.permute.xlu1 %2345 }
 0x663   :  { %v2341_v36 = vpop.permute.xlu0 %2340  ;;  %v2348_v37 = vunpack.i.h.bf16 %v2346_v35  ;;  %v2347_v39 = vunpack.i.l.bf16 %v2346_v35 }
 0x664   :  { %v2343_v40 = vunpack.i.h.bf16 %v2341_v36  ;;  %v2342_v41 = vunpack.i.l.bf16 %v2341_v36 }
 0x665   :  { %v2286_v44 = vpack.c.bf16 %v2348_v37, %v2347_v39 }
 0x666   :  { %v2278_v42 = vpack.c.bf16 %v2343_v40, %v2342_v41 }
 0x668   :  { %2279 = vmatprep.subr.bf16.mxu1 %v2278_v42 }
 0x669   :  { %2281 = vmatpush3.bf16.msra.mxu1 %v2278_v42 }
 0x66a   :  { %v2378_v45 = vpop.eup %2377  ;;  %2287 = vmatprep.subr.bf16.mxu1 %v2286_v44 }
 0x66b   :  { %v2380_v31 = vpop.eup %2379  ;;  %v1259_v47 = vmul.f32 %v2378_v45, %v2372_v23 }
 0x66c   :  { %2058 = vmatmul.mubr.msk.f32.vlgmr.msra.gmra.mrb[12].mxu1 %vm769_vm15, %v1019_v46  ;;  %v1261_v48 = vmul.f32 %v2380_v31, %v2370_v22 }
 0x66d   :  { %2289 = vmatpush3.bf16.msra.mxu1 %v2286_v44  ;;  %2071 = vmatprep.mubr.msk.f32.mxu1 %vm769_vm15, %v1259_v47 }
 0x670   :  { %2072 = vmatmul.mubr.msk.f32.vlgmr.msra.gmra.mrb[14].mxu1 %vm769_vm15, %v1261_v48 }
 0x671   :  { %2078 = vmatprep.mubr.msk.f32.mxu1 %vm2453_vm10, %v2447_v32 }
 0x73f   :  { %v2059_v50 = vpop.f32.mrb[12].mxu1 }
 0x740   :  { %vm1110_vm3 = vcmp.gt.f32.partialorder %v2059_v50, 0.0  ;;  %v1112_v51 = vmul.f32 0.1, %v2059_v50  ;;  %v1100_v52 = vpop.f32.mrb[13].mxu1 }
 0x741   :  { %vm1109_vm4 = vcmp.gt.f32.partialorder %v1100_v52, 0.0  ;;  %v1111_v53 = vmul.f32 0.1, %v1100_v52 }
 0x742   :  { %v1114_v54 = vsel %vm1110_vm3, %v2059_v50, %v1112_v51  ;;  %vm1481_vm3 = vcmask 1040384  }
 0x743   :  { %v2073_v56 = vpop.f32.mrb[14].mxu1  ;;  %v1118_v57 = vsel %vm879_vm5, %v1114_v54, 0.0  ;;  %v1113_v58 = vsel %vm1109_vm4, %v1100_v52, %v1111_v53 }
 0x744   :  { %vm1350_vm6 = vcmp.gt.f32.partialorder %v2073_v56, 0.0  ;;  %v1352_v59 = vmul.f32 0.1, %v2073_v56  ;;  %1119 = vadd.xlane.f32.xlu0 %v1118_v57  ;;  %v1340_v60 = vpop.f32.mrb[15].mxu1  ;;  %v1115_v61 = vsel %vm879_vm5, %v1113_v58, 0.0 }
 0x745   :  { %vm1349_vm7 = vcmp.gt.f32.partialorder %v1340_v60, 0.0  ;;  %v1351_v63 = vmul.f32 0.1, %v1340_v60  ;;  %1116 = vadd.xlane.f32.xlu1 %v1115_v61  ;;  %v1873_v61 = vld [vmem:[%s3173_s9 + $0x1] ss:$0 sm:$0xff] }
 0x746   :  { %v1354_v0 = vsel %vm1350_vm6, %v2073_v56, %v1352_v59 }
 0x747   :  { %v1353_v24 = vsel %vm1349_vm7, %v1340_v60, %v1351_v63  ;;  %v1358_v27 = vsel %vm879_vm5, %v1354_v0, 0.0 }
 0x748   :  { %v1355_v38 = vsel %vm879_vm5, %v1353_v24, 0.0 }
 0x749   :  { %1356 = vadd.xlane.f32.xlu0 %v1355_v38  ;;  %1359 = vadd.xlane.f32.xlu1 %v1358_v27 }
 0x74d   :  { %881 = vadd.xlane.f32.xlu0 %v880_v3  ;;  %884 = vadd.xlane.f32.xlu1 %v883_v4 }
 0x7d1   :  { %v1120_v5 = vpop.xlane.xlu0 %1119 }
 0x7d2   :  { %v1122_v7 = vmul.f32 0.03125, %v1120_v5  ;;  %v1117_v8 = vpop.xlane.xlu1 %1116  ;;  %v1877_v5 = vld [vmem:[%s3173_s9 + $0x2] ss:$0 sm:$0xff] }
 0x7d3   :  { %v1121_v9 = vmul.f32 0.03125, %v1117_v8 }
 0x7d4   :  { %v1124_v10 = vsub.f32 %v1114_v54, %v1122_v7 }
 0x7d5   :  { %v1123_v11 = vsub.f32 %v1113_v58, %v1121_v9  ;;  %v1872_v58 = vld [vmem:[%s3172_s8 + $0x1] ss:$0 sm:$0xff] }
 0x7d6   :  { %v1357_v12 = vpop.xlane.xlu0 %1356  ;;  %v1360_v13 = vpop.xlane.xlu1 %1359  ;;  %v1126_v14 = vmul.f32 %v1124_v10, %v1124_v10 }
 0x7d7   :  { %v1361_v15 = vmul.f32 0.03125, %v1357_v12  ;;  %v1362_v16 = vmul.f32 0.03125, %v1360_v13  ;;  %v1125_v49 = vmul.f32 %v1123_v11, %v1123_v11 }
 0x7d8   :  { %v1130_v6 = vsel %vm879_vm5, %v1126_v14, 0.0 }
 0x7d9   :  { %v2957_v17 = vsub.f32 %v1353_v24, %v1361_v15  ;;  %v2959_v18 = vsub.f32 %v1354_v0, %v1362_v16  ;;  %1131 = vadd.xlane.f32.xlu1 %v1130_v6  ;;  %v1127_v19 = vsel %vm879_vm5, %v1125_v49, 0.0  ;;  %v2450_v24 = vmov 0   ;;  %v1869_v15 = vld [vmem:[%s3173_s9] ss:$0 sm:$0xff] }
 0x7da   :  { %v882_v20 = vpop.xlane.xlu0 %881  ;;  %1128 = vadd.xlane.f32.xlu0 %v1127_v19  ;;  %v885_v21 = vpop.xlane.xlu1 %884  ;;  %2350 = vset.pattern.permute.xlu1 %v2450_v24  ;;  %v692_v6 = vld [vmem:[%s3187_s18] sm:$0xff] }
 0x7db   :  { %v887_v22 = vmul.f32 0.03125, %v882_v20  ;;  %v888_v23 = vmul.f32 0.03125, %v885_v21  ;;  %v1365_v25 = vmul.f32 %v2957_v17, %v2957_v17  ;;  %v1366_v26 = vmul.f32 %v2959_v18, %v2959_v18  ;;  %2349 = vset.pattern.permute.xlu0 %v2450_v24  ;;  %v693_v20 = vld [vmem:[%s3187_s18 + $0x8] sm:$0xff] }
 0x7dd   :  { %v2966_v28 = vsub.f32 %v877_v1, %v887_v22  ;;  %v2968_v29 = vsub.f32 %v878_v2, %v888_v23  ;;  %v1367_v30 = vsel %vm879_vm5, %v1365_v25, 0.0  ;;  %v1370_v33 = vsel %vm879_vm5, %v1366_v26, 0.0  ;;  %v1876_v1 = vld [vmem:[%s3172_s8 + $0x2] ss:$0 sm:$0xff] }
 0x7de   :  { %1368 = vadd.xlane.f32.xlu0 %v1367_v30  ;;  %1371 = vadd.xlane.f32.xlu1 %v1370_v33  ;;  %v1437_v33 = vld [vmem:[%s3166_s2] sm:$0xff] }
 0x7df   :  { %v891_v34 = vmul.f32 %v2966_v28, %v2966_v28  ;;  %v892_v35 = vmul.f32 %v2968_v29, %v2968_v29  ;;  %vm1439_vm11 = vcmp.gt.f32.partialorder %v1437_v33, 0.5 }
 0x7e1   :  { %v893_v36 = vsel %vm879_vm5, %v891_v34, 0.0  ;;  %v896_v37 = vsel %vm879_vm5, %v892_v35, 0.0 }
 0x7e2   :  { %894 = vadd.xlane.f32.xlu0 %v893_v36  ;;  %897 = vadd.xlane.f32.xlu1 %v896_v37  ;;  %v1438_v36 = vld [vmem:[%s3166_s2 + $0x8] sm:$0xff] }
 0x7e3   :  { %vm1440_vm12 = vcmp.gt.f32.partialorder %v1438_v36, 0.5 }
 0x866   :  { %v1132_v39 = vpop.xlane.xlu1 %1131 }
 0x867   :  { %v1134_v40 = vmul.f32 0.03125, %v1132_v39  ;;  %v1129_v41 = vpop.xlane.xlu0 %1128  ;;  %v1441_v39 = vsel %vm1439_vm11, 1, %v2450_v24 }
 0x868   :  { %v1133_v42 = vmul.f32 0.03125, %v1129_v41  ;;  %v1442_v41 = vsel %vm1440_vm12, 1, %v2450_v24 }
 0x869   :  { %v1136_v43 = vadd.f32 1e-05, %v1134_v40 }
 0x86a   :  { %v1135_v44 = vadd.f32 1e-05, %v1133_v42  ;;  %v2454_v42 = vmov 1  }
 0x86b   :  { %2381 = vrsqrt.f32 %v1136_v43  ;;  %v1369_v45 = vpop.xlane.xlu0 %1368  ;;  %v1372_v46 = vpop.xlane.xlu1 %1371  ;;  %v1557_v43 = vld [vmem:[%s3174_s10] sm:$0xff] }
 0x86c   :  { %2383 = vrsqrt.f32 %v1135_v44  ;;  %v1373_v31 = vmul.f32 0.03125, %v1369_v45  ;;  %v1374_v47 = vmul.f32 0.03125, %v1372_v46  ;;  %v1558_v44 = vld [vmem:[%s3174_s10 + $0x8] sm:$0xff]  ;;  %v1559_v45 = vld [vmem:[%s3174_s10 + $0x10] sm:$0xff] }
 0x86d   :  { %v2294_v46 = vpack.c.bf16 %v1558_v44, %v1557_v43  ;;  %v1571_v43 = vld [vmem:[%s3174_s10 + $0x70] sm:$0xff]  ;;  %v1572_v44 = vld [vmem:[%s3174_s10 + $0x78] sm:$0xff] }
 0x86e   :  { %v1375_v48 = vadd.f32 1e-05, %v1373_v31  ;;  %v1376_v50 = vadd.f32 1e-05, %v1374_v47  ;;  %v1560_v31 = vld [vmem:[%s3174_s10 + $0x18] sm:$0xff] }
 0x86f   :  { %v895_v51 = vpop.xlane.xlu0 %894  ;;  %v898_v52 = vpop.xlane.xlu1 %897  ;;  %v2297_v47 = vpack.c.bf16 %v1560_v31, %v1559_v45  ;;  %v2315_v45 = vpack.c.bf16 %v1572_v44, %v1571_v43 }
 0x870   :  { %2385 = vrsqrt.f32 %v1375_v48  ;;  %v899_v53 = vmul.f32 0.03125, %v895_v51  ;;  %v900_v54 = vmul.f32 0.03125, %v898_v52  ;;  %v1561_v48 = vld [vmem:[%s3174_s10 + $0x20] sm:$0xff]  ;;  %v1563_v52 = vld [vmem:[%s3174_s10 + $0x30] sm:$0xff] }
 0x871   :  { %2387 = vrsqrt.f32 %v1376_v50  ;;  %v1562_v50 = vld [vmem:[%s3174_s10 + $0x28] sm:$0xff] }
 0x872   :  { %v901_v55 = vadd.f32 1e-05, %v899_v53  ;;  %v902_v56 = vadd.f32 1e-05, %v900_v54  ;;  %v2300_v51 = vpack.c.bf16 %v1562_v50, %v1561_v48  ;;  %v1564_v53 = vld [vmem:[%s3174_s10 + $0x38] sm:$0xff]  ;;  %v1655_v48 = vld [vmem:[%s3176_s12] sm:$0xff] }
 0x873   :  { %v2303_v54 = vpack.c.bf16 %v1564_v53, %v1563_v52  ;;  %v1656_v50 = vld [vmem:[%s3176_s12 + $0x8] sm:$0xff]  ;;  %v1657_v52 = vld [vmem:[%s3176_s12 + $0x10] sm:$0xff]  ;;  %v1658_v53 = vld [vmem:[%s3176_s12 + $0x18] sm:$0xff] }
 0x874   :  { %2389 = vrsqrt.f32 %v901_v55  ;;  %v1565_v55 = vld [vmem:[%s3174_s10 + $0x40] sm:$0xff] }
 0x875   :  { %v2382_v57 = vpop.eup %2381  ;;  %2391 = vrsqrt.f32 %v902_v56  ;;  %v1566_v56 = vld [vmem:[%s3174_s10 + $0x48] sm:$0xff] }
 0x876   :  { %v2384_v59 = vpop.eup %2383  ;;  %v1140_v60 = vmul.f32 %v2382_v57, %v1124_v10  ;;  %v1868_v10 = vld [vmem:[%s3172_s8] ss:$0 sm:$0xff]  ;;  %v2306_v57 = vpack.c.bf16 %v1566_v56, %v1565_v55 }
 0x877   :  { %v1139_v62 = vmul.f32 %v2384_v59, %v1123_v11  ;;  %v1568_v59 = vld [vmem:[%s3174_s10 + $0x58] sm:$0xff]  ;;  %v1879_v55 = vld [vmem:[%s3175_s11] ss:$0 sm:$0xff] }
 0x878   :  { %v1147_v63 = vmul.f32 %v1872_v58, %v1140_v60 }
 0x879   :  { %v1146_v0 = vmul.f32 %v1872_v58, %v1139_v62  ;;  %v1567_v58 = vld [vmem:[%s3174_s10 + $0x50] sm:$0xff]  ;;  %v1570_v62 = vld [vmem:[%s3174_s10 + $0x68] sm:$0xff] }
 0x87a   :  { %v2386_v27 = vpop.eup %2385  ;;  %v1154_v38 = vadd.f32 %v1873_v61, %v1147_v63  ;;  %v2309_v60 = vpack.c.bf16 %v1568_v59, %v1567_v58 }
 0x87b   :  { %v2388_v2 = vpop.eup %2387  ;;  %v1153_v3 = vadd.f32 %v1873_v61, %v1146_v0  ;;  %v1379_v4 = vmul.f32 %v2386_v27, %v2957_v17  ;;  %v1569_v61 = vld [vmem:[%s3174_s10 + $0x60] sm:$0xff] }
 0x87c   :  { %1159 = vrot.lane.b32.xlu1 %v1154_v38, %s2451_s25  ;;  %v1380_v7 = vmul.f32 %v2388_v2, %v2959_v18  ;;  %v2312_v63 = vpack.c.bf16 %v1570_v62, %v1569_v61  ;;  %v2397_v2 = vld [vmem:[%s3186_s23] sm:$0xff] }
 0x87d   :  { %1157 = vrot.lane.b32.xlu0 %v1153_v3, %s2451_s25  ;;  %v1386_v8 = vmul.f32 %v1876_v1, %v1379_v4  ;;  %v2398_v4 = vld [vmem:[%s3186_s23 + $0x8] sm:$0xff] }
 0x87e   :  { %v2390_v9 = vpop.eup %2389  ;;  %v1387_v13 = vmul.f32 %v1876_v1, %v1380_v7 }
 0x87f   :  { %v2392_v11 = vpop.eup %2391  ;;  %v1393_v12 = vadd.f32 %v1877_v5, %v1386_v8  ;;  %v905_v14 = vmul.f32 %v2390_v9, %v2966_v28 }
 0x880   :  { %v906_v16 = vmul.f32 %v2392_v11, %v2968_v29  ;;  %v1394_v18 = vadd.f32 %v1877_v5, %v1387_v13  ;;  %v2452_v29 = vmov 0.0|0.0   ;;  %v1436_v13 = vld [vmem:[%s3167_s3] sm:$0x3] }
 0x881   :  { %1397 = vrot.lane.b32.xlu1 %v1393_v12, %s2448_s6  ;;  %v912_v49 = vmul.f32 %v1868_v10, %v905_v14  ;;  %2290 = vmatprep.subr.bf16.mxu1 %v2452_v29 }
 0x882   :  { %v913_v17 = vmul.f32 %v1868_v10, %v906_v16  ;;  %2293 = vmatprep.subr.bf16.mxu0 %v2452_v29 }
 0x883   :  { %v919_v19 = vadd.f32 %v1869_v15, %v912_v49  ;;  %2295 = vmatpush3.bf16.msra.mxu0 %v2294_v46 }
 0x884   :  { %v920_v21 = vadd.f32 %v1869_v15, %v913_v17  ;;  %2296 = vmatprep.subr.bf16.mxu0 %v2452_v29 }
 0x885   :  { %1399 = vrot.lane.b32.xlu1 %v1394_v18, %s2448_s6  ;;  %v921_v22 = vadd.f32 %v919_v19, %v692_v6 }
 0x886   :  { %v922_v23 = vadd.f32 %v920_v21, %v693_v20 }
 0x887   :  { %1407 = vrot.lane.b32.xlu0 %v921_v22, %s2451_s25  ;;  %2298 = vmatpush3.bf16.msra.mxu0 %v2297_v47 }
 0x888   :  { %2299 = vmatprep.subr.bf16.mxu0 %v2452_v29 }
 0x889   :  { %1409 = vrot.lane.b32.xlu1 %v922_v23, %s2451_s25 }
 0x88b   :  { %2301 = vmatpush3.bf16.msra.mxu0 %v2300_v51  ;;  %v2318_v51 = vpack.c.bf16 %v1656_v50, %v1655_v48 }
 0x88c   :  { %2302 = vmatprep.subr.bf16.mxu0 %v2452_v29 }
 0x88f   :  { %2304 = vmatpush3.bf16.msra.mxu0 %v2303_v54  ;;  %v2321_v54 = vpack.c.bf16 %v1658_v53, %v1657_v52 }
 0x890   :  { %2305 = vmatprep.subr.bf16.mxu0 %v2452_v29 }
 0x893   :  { %2307 = vmatpush3.bf16.msra.mxu0 %v2306_v57 }
 0x894   :  { %2308 = vmatprep.subr.bf16.mxu0 %v2452_v29 }
 0x897   :  { %2310 = vmatpush3.bf16.msra.mxu0 %v2309_v60 }
 0x898   :  { %2311 = vmatprep.subr.bf16.mxu0 %v2452_v29 }
 0x89b   :  { %2313 = vmatpush3.bf16.msra.mxu0 %v2312_v63 }
 0x89c   :  { %2314 = vmatprep.subr.bf16.mxu0 %v2452_v29 }
 0x89f   :  { %2316 = vmatpush3.bf16.msra.mxu0 %v2315_v45 }
 0x8ee   :  { %v1160_v25 = vpop.permute.xlu1 %1159 }
 0x8ef   :  { %v1164_v26 = vadd.f32 %v1160_v25, %v693_v20  ;;  %v1158_v28 = vpop.permute.xlu0 %1157 }
 0x8f0   :  { %v1163_v30 = vadd.f32 %v1158_v28, %v692_v6 }
 0x8f1   :  { %1417 = vrot.lane.b32.xlu1 %v1164_v26, %s2451_s25 }
 0x8f2   :  { %1415 = vrot.lane.b32.xlu0 %v1163_v30, %s2451_s25 }
 0x8f3   :  { %v1398_v34 = vpop.permute.xlu1 %1397 }
 0x8f4   :  { %v1403_v35 = vadd.f32 %v1398_v34, %v692_v6 }
 0x8f6   :  { %1423 = vrot.lane.b32.xlu0 %v1403_v35, %s2451_s25 }
 0x8f7   :  { %v1400_v37 = vpop.permute.xlu1 %1399 }
 0x8f8   :  { %v1404_v40 = vadd.f32 %v1400_v37, %v693_v20 }
 0x8f9   :  { %v1408_v0 = vpop.permute.xlu0 %1407 }
 0x8fa   :  { %1444 = vperm.xlu0 %2349, %v1441_v39   ;;  %1425 = vrot.lane.b32.xlu1 %v1404_v40, %s2451_s25  ;;  %v1429_v3 = vsel %vm879_vm5, %v2397_v2, %v1408_v0  ;;  %v1744_v0 = vld [vmem:[%s3178_s14] sm:$0xff] }
 0x8fb   :  { %v1410_v24 = vpop.permute.xlu1 %1409  ;;  %v1880_v2 = vld [vmem:[%s3177_s13] ss:$0 sm:$0xff] }
 0x8fc   :  { %v1430_v5 = vsel %vm879_vm5, %v2398_v4, %v1410_v24  ;;  %v1745_v24 = vld [vmem:[%s3178_s14 + $0x8] sm:$0xff] }
 0x8fe   :  { %2352 = vset.pattern.permute.xlu0 %v2454_v42  ;;  %1447 = vperm.xlu1 %2350, %v1442_v41  }
 0x8ff   :  { %1466 = vperm.xlu0 %2352, %v1442_v41  }
 0x902   :  { %2351 = vset.pattern.permute.xlu1 %v2454_v42 }
 0x903   :  { %1463 = vperm.xlu1 %2351, %v1441_v39  }
 0x963   :  { %v1418_v38 = vpop.permute.xlu1 %1417 }
 0x964   :  { %v1416_v27 = vpop.permute.xlu0 %1415  ;;  %v1433_v7 = vsel %vm1431_vm13, %v1430_v5, %v1418_v38  ;;  %v1746_v38 = vld [vmem:[%s3178_s14 + $0x10] sm:$0xff] }
 0x965   :  { %v1432_v8 = vsel %vm1431_vm13, %v1429_v3, %v1416_v27  ;;  %v2324_v27 = vpack.c.bf16 %v1745_v24, %v1744_v0 }
 0x968   :  { %v1424_v1 = vpop.permute.xlu0 %1423 }
 0x969   :  { %v1434_v10 = vsel %vm188_vm1, %v1432_v8, %v1424_v1 }
 0x96c   :  { %v1426_v9 = vpop.permute.xlu1 %1425 }
 0x96d   :  { %v1435_v11 = vsel %vm188_vm1, %v1433_v7, %v1426_v9 }
 0x96e   :  { %v2291_v12 = vpack.c.bf16 %v1435_v11, %v1434_v10 }
 0x970   :  { %2292 = vmatpush3.bf16.msra.mxu1 %v2291_v12 }
 0x971   :  { %2317 = vmatprep.subr.bf16.mxu1 %v2452_v29 }
 0x973   :  { %2079 = vmatmul.mubr.msk.f32.vlgmr.msra.gmra.mrb[16].mxu1 %vm769_vm15, %v1436_v13 }
 0x974   :  { %2124 = vmatprep.mubr.msk.f32.mxu1 %vm2453_vm10, %v2447_v32  ;;  %2319 = vmatpush3.bf16.msra.mxu1 %v2318_v51 }
 0x975   :  { %2320 = vmatprep.subr.bf16.mxu1 %v2452_v29 }
 0x978   :  { %2322 = vmatpush3.bf16.msra.mxu1 %v2321_v54 }
 0x979   :  { %v1445_v14 = vpop.permute.xlu0 %1444  ;;  %2323 = vmatprep.subr.bf16.mxu1 %v2452_v29 }
 0x97a   :  { %vm1449_vm14 = vcmp.eq.s32.totalorder %v1445_v14, 1 }
 0x97b   :  { %v1451_v49 = vsel %vm1449_vm14, %v1434_v10, -1e+30 }
 0x97d   :  { %v1448_v15 = vpop.permute.xlu1 %1447 }
 0x97e   :  { %vm1450_vm0 = vcmp.eq.s32.totalorder %v1448_v15, 1  ;;  %v1467_v16 = vpop.permute.xlu0 %1466 }
 0x97f   :  { %v1452_v6 = vsel %vm1450_vm0, %v1435_v11, -1e+30  ;;  %vm1469_vm1 = vcmp.eq.s32.totalorder %v1467_v16, 1 }
 0x980   :  { %v1453_v17 = vmax.f32 %v1451_v49, %v1452_v6  ;;  %v1471_v21 = vsel %vm1469_vm1, %v1435_v11, -1e+30 }
 0x982   :  { %v1454_v18 = vrot.slane %v1453_v17, 4  ;;  %v1464_v19 = vpop.permute.xlu1 %1463 }
 0x983   :  { %vm1468_vm2 = vcmp.eq.s32.totalorder %v1464_v19, 1 }
 0x984   :  { %v1455_v20 = vmax.f32 %v1453_v17, %v1454_v18  ;;  %v1470_v22 = vsel %vm1468_vm2, %v1434_v10, -1e+30 }
 0x985   :  { %v1472_v23 = vmax.f32 %v1470_v22, %v1471_v21 }
 0x986   :  { %v1456_v25 = vrot.slane %v1455_v20, 2 }
 0x987   :  { %v1473_v26 = vrot.slane %v1472_v23, 4 }
 0x988   :  { %v1457_v28 = vmax.f32 %v1455_v20, %v1456_v25 }
 0x989   :  { %v1474_v30 = vmax.f32 %v1472_v23, %v1473_v26 }
 0x98a   :  { %v1458_v33 = vrot.slane %v1457_v28, 1 }
 0x98b   :  { %v1475_v34 = vrot.slane %v1474_v30, 2 }
 0x98c   :  { %v1459_v36 = vmax.f32 %v1457_v28, %v1458_v33 }
 0x98d   :  { %v1476_v35 = vmax.f32 %v1474_v30, %v1475_v34 }
 0x98e   :  { %vm1460_vm15 = vcmp.le.f32.partialorder %v1459_v36, -5e+29 }
 0x98f   :  { %v1477_v37 = vrot.slane %v1476_v35, 1  ;;  %v1461_v40 = vsel %vm1460_vm15, 0.0, %v1459_v36 }
 0x991   :  { %v1478_v39 = vmax.f32 %v1476_v35, %v1477_v37 }
 0x993   :  { %vm1479_vm4 = vcmp.le.f32.partialorder %v1478_v39, -5e+29 }
 0x994   :  { %v1480_v41 = vsel %vm1479_vm4, 0.0, %v1478_v39 }
 0x995   :  { %v1482_v42 = vsel %vm1481_vm3, %v1461_v40, %v1480_v41 }
 0xa46   :  { %v1552_v46 = vpop.f32.mrb[16].mxu1 }
 0xa47   :  { %v1553_v31 = vadd.f32 %v1552_v46, %v1482_v42  ;;  %v2080_v47 = vpop.f32.mrb[17].mxu1 }
 0xa49   :  { %1556 = vst [vmem:[#allocation4] sm:$0x3] %v1553_v31  ;;  %2114 = vmatmul.mubr.f32.vlgmr.msra.gmra.mrb[12].mxu0 %v1553_v31 }
 0xb1c   :  { %v1646_v56 = vpop.f32.mrb[12].mxu0 }
 0xb1d   :  { %v1647_v57 = vadd.f32 %v1879_v55, %v1646_v56  ;;  %v2115_v58 = vpop.f32.mrb[13].mxu0 }
 0xb1f   :  { %v1651_v59 = vmul.f32 0.70710677, %v1647_v57  ;;  %v1650_v61 = vmul.f32 0.5, %v1647_v57 }
 0xb21   :  { %2393 = verf.f32 %v1651_v59 }
 0xb2b   :  { %v2394_v60 = vpop.eup %2393 }
 0xb2c   :  { %v1653_v62 = vadd.f32 1.0, %v2394_v60 }
 0xb2e   :  { %v1654_v63 = vmul.f32 %v1653_v62, %v1650_v61 }
 0xb30   :  { %2125 = vmatmul.mubr.msk.f32.vlgmr.msra.gmra.mrb[18].mxu1 %vm879_vm5, %v1654_v63 }
 0xb31   :  { %2135 = vmatprep.mubr.msk.f32.mxu1 %vm2453_vm10, %v2447_v32  ;;  %2325 = vmatpush3.bf16.msra.mxu1 %v2324_v27  ;;  %v1747_v32 = vld [vmem:[%s3178_s14 + $0x18] sm:$0xff]  ;;  %s2399_s14 = scalar_lea.vmem %s1846_s30, 32 }
 0xb32   :  { %2326 = vmatprep.subr.bf16.mxu1 %v2452_v29  ;;  %v2327_v1 = vpack.c.bf16 %v1747_v32, %v1746_v38  ;;  %p2400_p0 = scmp.ne.s32.totalorder %s1846_s30, %s2399_s14  ;;  %p2405_p2 = scmp.lt.s32.totalorder %s2399_s14, %s2399_s14 }
 0xb34   :  { %p2406_p3 = por %p2405_p2, %p2404_p1 }
 0xb35   :  { %2328 = vmatpush3.bf16.msra.mxu1 %v2327_v1 }
 0xb36   :  { %p2407_p4 = pnand %p2406_p3, %p2400_p0 }
 0xc03   :  { %v1735_v3 = vpop.f32.mrb[18].mxu1 }
 0xc04   :  { %v1736_v4 = vadd.f32 %v1880_v2, %v1735_v3  ;;  %v2126_v5 = vpop.f32.mrb[19].mxu1 }
 0xc06   :  { %v1740_v7 = vmul.f32 0.70710677, %v1736_v4  ;;  %v1739_v8 = vmul.f32 0.5, %v1736_v4 }
 0xc08   :  { %2395 = verf.f32 %v1740_v7 }
 0xc12   :  { %v2396_v29 = vpop.eup %2395 }
 0xc13   :  { %v1742_v9 = vadd.f32 1.0, %v2396_v29 }
 0xc15   :  { %v1743_v10 = vmul.f32 %v1742_v9, %v1739_v8 }
 0xc17   :  { %2136 = vmatmul.mubr.msk.f32.vlgmr.msra.gmra.mrb[20].mxu1 %vm879_vm5, %v1743_v10 }
 0xc18   :  { %2410 = shalt.err (!%p2407_p4)
}
 0xc19   :  { %s2411_s23 = scalar_lea.hbm %s3181_s17, 32 }
 0xc1a   :  { %p2412_p5 = scmp.ne.s32.totalorder %s3181_s17, %s2411_s23  ;;  %p2415_p6 = scmp.lt.u32.totalorder %s2411_s23, %s3181_s17 }
 0xc1c   :  { %p2417_p7 = pnand %p2415_p6, %p2412_p5 }
 0xc1e   :  { %2420 = shalt.err (!%p2417_p7)
}
 0xc1f   :  { %1848 = dma.vmem_to_hbm [thread:$0]  %s1846_s30, 32, %s3181_s17, [#allocation5]   ;;  %v1882_v11 = vld [vmem:[%s3179_s15] ss:$0 sm:$0xff] }
 0xc20   :  { %s2456_s1 = smov [#allocation2]  }
 0xc21   :  { %s1835_s20 = sshll.u32 %s2456_s1, 4  ;;  %s1836_s20 = int_to_ptr.vmem [resolvable:$true] %s1835_s20 }
 0xc22   :  { %s2421_s21 = scalar_lea.vmem %s1836_s20, 32  ;;  %p2426_p9 = scmp.lt.s32.totalorder %s1836_s20, %s1836_s20 }
 0xc23   :  { %p2422_p8 = scmp.ne.s32.totalorder %s1836_s20, %s2421_s21  ;;  %p2427_p10 = scmp.lt.s32.totalorder %s2421_s21, %s2421_s21 }
 0xc25   :  { %p2428_p11 = por %p2427_p10, %p2426_p9 }
 0xc27   :  { %p2429_p12 = pnand %p2428_p11, %p2422_p8 }
 0xcea   :  { %v1824_v12 = vpop.f32.mrb[20].mxu1 }
 0xceb   :  { %v1825_v13 = vadd.f32 %v1882_v11, %v1824_v12  ;;  %v2137_v14 = vpop.f32.mrb[21].mxu1 }
 0xced   :  { %1828 = vst [vmem:[#allocation2] sm:$0x3] %v1825_v13 }
 0xcee   :  { %2432 = shalt.err (!%p2429_p12)
}
 0xcef   :  { %s2433_s12 = scalar_lea.hbm %s3180_s16, 32 }
 0xcf0   :  { %p2434_p13 = scmp.ne.s32.totalorder %s3180_s16, %s2433_s12  ;;  %p2437_p0 = scmp.lt.u32.totalorder %s2433_s12, %s3180_s16 }
 0xcf2   :  { %p2439_p1 = pnand %p2437_p0, %p2434_p13 }
 0xcf4   :  { %2442 = shalt.err (!%p2439_p1)
}
 0xcf5   :  { %1838 = dma.vmem_to_hbm [thread:$0]  %s1836_s20, 32, %s3180_s16, [#allocation3]  }
 0xcf6   :  { %2443 = dma.done.wait [#allocation3], 32  }
 0xcf7   :  { %2444 = vsyncadd [#allocation3], 4294967264 }
 0xcf8   :  { %2445 = dma.done.wait [#allocation5], 32  }
 0xcf9   :  { %2446 = vsyncadd [#allocation5], 4294967264 }
 0xcfa   :  { %1855 = vsyncpa [#allocation3], 1 }
 0xcfb   :  { %1856 = vsyncpa [#allocation5], 1 }

</bundles_post_ra>
